<compile_context>
chip_gen: v5e
topology: v5e:2x2
jax: 0.10.0
libtpu: 0.0.40
codegen_flags: <defaults>
</compile_context>

<pallas_src>
import jax
import jax.numpy as jnp
from jax.experimental import pallas as pl
from jax.experimental.pallas import tpu as pltpu

# ---- model dims (small, TPU-friendly) ----------------------------------------
B = 2            # batch
S = 16           # sequence length
H = 128          # hidden size
NUM_HEADS = 4
HEAD_DIM = 32    # NUM_HEADS * HEAD_DIM == H
INTER = 256      # gated-MLP intermediate size
EPS = 1e-6
SCALE = 1.0 / (HEAD_DIM ** 0.5)
ROPE_THETA = 10000.0
NEG_BIG = -1e30  # finite mask value (diagonal guarantees an unmasked entry/row)
M = B * S        # rows processed per kernel invocation


# ---- fused transformer-block kernel ------------------------------------------
def transformer_block_kernel(
    x_ref,       # (B, S, H)      float32
    an_w_ref,    # (1, H)         float32  attn RMSNorm weight
    wqkr_ref,    # (H, 4H)        bfloat16 [Wq | rot(Wq) | Wk | rot(Wk)]
    wv_ref,      # (H, H)         bfloat16
    wo_ref,      # (H, H)         bfloat16
    mn_w_ref,    # (1, H)         float32  mlp RMSNorm weight
    wgu_ref,     # (H, 2*INTER)   bfloat16 [Wgate | Wup]
    wd_ref,      # (INTER, H)     bfloat16
    cos_ref,     # (M, H)         float32  per-head-tiled cos table
    sin_ref,     # (M, H)         float32
    bias_ref,    # (M, M)         float32  additive block-diag causal bias
    o_ref,       # (B, S, H)      float32
):
    x = x_ref[...].reshape(M, H).astype(jnp.float32)       # residual stream (M, H)

    def rmsnorm_half(v, w_ref):
        w = w_ref[...].astype(jnp.float32)                  # (1, H)
        var = jnp.mean(v * v, axis=-1, keepdims=True)
        return (v * jax.lax.rsqrt(var + EPS) * w).astype(jnp.bfloat16)

    # ---------------- attention ----------------
    y = rmsnorm_half(x, an_w_ref)                           # (M, H) bf16

    # q | rot(q) | k | rot(k) in one 512-wide matmul, v separately (128-wide).
    qkr = jnp.dot(y, wqkr_ref[...], preferred_element_type=jnp.float32)   # (M, 4H)
    v = jnp.dot(y, wv_ref[...], preferred_element_type=jnp.float32)       # (M, H)

    cos = cos_ref[...]
    sin = sin_ref[...]
    q_rope = ((qkr[:, 0 * H:1 * H] * cos + qkr[:, 1 * H:2 * H] * sin) * SCALE
              ).astype(jnp.bfloat16)                         # (M, H)
    k_rope = (qkr[:, 2 * H:3 * H] * cos + qkr[:, 3 * H:4 * H] * sin
              ).astype(jnp.bfloat16)                         # (M, H)
    v_b = v.astype(jnp.bfloat16)                             # (M, H)

    # Head-batched attention: 2 batched MXU matmuls instead of 8 tiny ones.
    def to_heads(t):  # (M, H) -> (NUM_HEADS, M, HEAD_DIM)
        return jnp.stack(
            [t[:, h * HEAD_DIM:(h + 1) * HEAD_DIM] for h in range(NUM_HEADS)],
            axis=0)

    qh = to_heads(q_rope)
    kh = to_heads(k_rope)
    vh = to_heads(v_b)

    s = jnp.einsum("hqd,hkd->hqk", qh, kh,
                   preferred_element_type=jnp.float32)       # (NH, M, M) f32
    s = s + bias_ref[...][None, :, :]                        # additive causal mask
    m = jnp.max(s, axis=-1, keepdims=True)
    p = jnp.exp(s - m)
    l = jnp.sum(p, axis=-1, keepdims=True)                   # (NH, M, 1)
    pv = jnp.einsum("hqk,hkd->hqd", p.astype(jnp.bfloat16), vh,
                    preferred_element_type=jnp.float32)      # (NH, M, Dh)
    # Fold the softmax normalization into the (smaller) pv output.
    pv = pv * pl.reciprocal(l, approx=True)

    # Merge heads back to lanes; single full-K (M,128)x(128,128) O-projection
    # and a single residual add.
    attn = jnp.concatenate([pv[h] for h in range(NUM_HEADS)], axis=-1)    # (M, H)
    x = x + jnp.dot(attn.astype(jnp.bfloat16), wo_ref[...],
                    preferred_element_type=jnp.float32)

    # ---------------- gated MLP ----------------
    y2 = rmsnorm_half(x, mn_w_ref)                           # (M, H) bf16
    gu = jnp.dot(y2, wgu_ref[...], preferred_element_type=jnp.float32)    # (M, 2*INTER)
    g = gu[:, :INTER]
    u = gu[:, INTER:]
    h_act = (g * jax.nn.sigmoid(g)) * u                      # silu(gate) * up, f32
    x = x + jnp.dot(h_act.astype(jnp.bfloat16), wd_ref[...],
                    preferred_element_type=jnp.float32)

    o_ref[...] = x.reshape(B, S, H).astype(o_ref.dtype)


@jax.jit
def transformer_block(x, an_w, wqkr, wv, wo, mn_w, wgu, wd, cos_t, sin_t, bias):
    full = lambda a: pl.BlockSpec(a.shape, lambda i, _nd=a.ndim: (0,) * _nd)
    return pl.pallas_call(
        transformer_block_kernel,
        out_shape=jax.ShapeDtypeStruct((B, S, H), jnp.float32),
        grid_spec=pltpu.PrefetchScalarGridSpec(
            num_scalar_prefetch=0,
            grid=(1,),   # single step: one TC, weights effectively single-buffered
            in_specs=[
                pl.BlockSpec((B, S, H), lambda i: (0, 0, 0)),   # x
                full(an_w), full(wqkr), full(wv), full(wo),
                full(mn_w), full(wgu), full(wd),
                full(cos_t), full(sin_t), full(bias),
            ],
            out_specs=pl.BlockSpec((B, S, H), lambda i: (0, 0, 0)),
        ),
        compiler_params=pltpu.CompilerParams(
            dimension_semantics=("arbitrary",)),
    )(x, an_w, wqkr, wv, wo, mn_w, wgu, wd, cos_t, sin_t, bias)


# ---- host-side weight / table preparation -------------------------------------
def rotate_half_cols(w):
    """rotate_half(y @ W) == y @ rotate_half_cols(W); exact in bf16 (perm+negate)."""
    w3 = w.reshape(H, NUM_HEADS, HEAD_DIM)
    w1 = w3[..., :HEAD_DIM // 2]
    w2 = w3[..., HEAD_DIM // 2:]
    return jnp.concatenate([-w2, w1], axis=-1).reshape(H, H)


def make_bias():
    """Block-diagonal causal additive bias for the collapsed (B*S) row layout."""
    ri = jnp.arange(M)[:, None]
    ci = jnp.arange(M)[None, :]
    allowed = (ri // S == ci // S) & (ci <= ri)
    return jnp.where(allowed, 0.0, NEG_BIG).astype(jnp.float32)


# ---- pure-JAX reference (same math / dtype casts) ------------------------------
def reference(x, an_w, wq, wk, wv, wo, mn_w, wg, wu, wd, cos, sin):
    def rms(v, w):
        var = jnp.mean(v * v, axis=-1, keepdims=True)
        return (v * jax.lax.rsqrt(var + EPS) * w).astype(jnp.bfloat16)

    def rope(t):
        d2 = HEAD_DIM // 2
        rot = jnp.concatenate([-t[..., d2:], t[..., :d2]], axis=-1)
        return t * cos + rot * sin

    x = x.astype(jnp.float32)
    y = rms(x, an_w[0])
    q = jnp.dot(y, wq, preferred_element_type=jnp.float32).reshape(B, S, NUM_HEADS, HEAD_DIM)
    k = jnp.dot(y, wk, preferred_element_type=jnp.float32).reshape(B, S, NUM_HEADS, HEAD_DIM)
    v = jnp.dot(y, wv, preferred_element_type=jnp.float32).reshape(B, S, NUM_HEADS, HEAD_DIM)
    q, k = rope(q.transpose(0, 2, 1, 3)), rope(k.transpose(0, 2, 1, 3))
    v = v.transpose(0, 2, 1, 3)
    s = jnp.einsum("bhqd,bhkd->bhqk", q, k) * SCALE
    mask = jnp.tril(jnp.ones((S, S), bool))
    s = jnp.where(mask, s, -jnp.inf)
    p = jax.nn.softmax(s, axis=-1)
    a = jnp.einsum("bhqk,bhkd->bhqd", p, v).transpose(0, 2, 1, 3).reshape(B, S, H)
    x = x + jnp.dot(a.astype(jnp.bfloat16), wo, preferred_element_type=jnp.float32)
    y = rms(x, mn_w[0])
    g = jnp.dot(y, wg, preferred_element_type=jnp.float32)
    u = jnp.dot(y, wu, preferred_element_type=jnp.float32)
    h = (g * jax.nn.sigmoid(g)) * u
    x = x + jnp.dot(h.astype(jnp.bfloat16), wd, preferred_element_type=jnp.float32)
    return x


if __name__ == "__main__":
    key = jax.random.PRNGKey(0)
    keys = jax.random.split(key, 8)

    x = jax.random.normal(keys[0], (B, S, H), dtype=jnp.float32)
    an_w = 1.0 + 0.05 * jax.random.normal(keys[1], (1, H), dtype=jnp.float32)
    mn_w = 1.0 + 0.05 * jax.random.normal(keys[2], (1, H), dtype=jnp.float32)
    wq = (0.02 * jax.random.normal(keys[3], (H, H))).astype(jnp.bfloat16)
    wk = (0.02 * jax.random.normal(keys[4], (H, H))).astype(jnp.bfloat16)
    wv = (0.02 * jax.random.normal(keys[5], (H, H))).astype(jnp.bfloat16)
    wo = (0.02 * jax.random.normal(keys[6], (H, H))).astype(jnp.bfloat16)
    kg, ku, kd = jax.random.split(keys[7], 3)
    wg = (0.02 * jax.random.normal(kg, (H, INTER))).astype(jnp.bfloat16)
    wu = (0.02 * jax.random.normal(ku, (H, INTER))).astype(jnp.bfloat16)
    wd = (0.02 * jax.random.normal(kd, (INTER, H))).astype(jnp.bfloat16)

    # RoPE tables (standard Llama half-rotation layout), per head.
    inv_freq = 1.0 / (ROPE_THETA ** (jnp.arange(0, HEAD_DIM, 2, dtype=jnp.float32) / HEAD_DIM))
    pos = jnp.arange(S, dtype=jnp.float32)
    ang = pos[:, None] * inv_freq[None, :]                        # (S, HEAD_DIM/2)
    cos = jnp.concatenate([jnp.cos(ang), jnp.cos(ang)], axis=-1)  # (S, HEAD_DIM)
    sin = jnp.concatenate([jnp.sin(ang), jnp.sin(ang)], axis=-1)

    # Fused / pre-rotated weights, lane-dense RoPE tables, additive mask bias.
    wqkr = jnp.concatenate(
        [wq, rotate_half_cols(wq), wk, rotate_half_cols(wk)], axis=1)   # (H, 4H) = (128, 512)
    wgu = jnp.concatenate([wg, wu], axis=1)                              # (H, 2*INTER)
    cos_t = jnp.tile(cos, (B, NUM_HEADS))                                # (M, H)
    sin_t = jnp.tile(sin, (B, NUM_HEADS))
    bias = make_bias()                                                   # (M, M)

    out = transformer_block(x, an_w, wqkr, wv, wo, mn_w, wgu, wd, cos_t, sin_t, bias)
    out = jax.block_until_ready(out)

    ref = reference(x, an_w, wq, wk, wv, wo, mn_w, wg, wu, wd, cos, sin)
    assert out.shape == (B, S, H) and out.dtype == jnp.float32
    err = float(jnp.max(jnp.abs(out - ref)))
    assert jnp.allclose(out, ref, rtol=2e-2, atol=2e-2), err

    print("KERNEL_OK")
</pallas_src>

<mosaic_0001>
module attributes {stable_mosaic.version = 11 : i64} {
  func.func @transformer_block_kernel(%arg0: i32, %arg1: memref<2x16x128xf32, #tpu.memory_space<vmem>>, %arg2: memref<1x128xf32, #tpu.memory_space<vmem>>, %arg3: memref<128x512xbf16, #tpu.memory_space<vmem>>, %arg4: memref<128x128xbf16, #tpu.memory_space<vmem>>, %arg5: memref<128x128xbf16, #tpu.memory_space<vmem>>, %arg6: memref<1x128xf32, #tpu.memory_space<vmem>>, %arg7: memref<128x512xbf16, #tpu.memory_space<vmem>>, %arg8: memref<256x128xbf16, #tpu.memory_space<vmem>>, %arg9: memref<32x128xf32, #tpu.memory_space<vmem>>, %arg10: memref<32x128xf32, #tpu.memory_space<vmem>>, %arg11: memref<32x32xf32, #tpu.memory_space<vmem>>, %arg12: memref<2x16x128xf32, #tpu.memory_space<vmem>>) attributes {dimension_semantics = [#tpu.dimension_semantics<arbitrary>], iteration_bounds = array<i64: 1>, scalar_prefetch = 0 : i64, scratch_operands = 0 : i64, tpu.core_type = #tpu.core_type<tc>, window_params = [{pipeline_mode = #tpu.pipeline_mode<synchronous>, transform_indices = @transform_0, window_bounds = array<i64: 2, 16, 128>}, {pipeline_mode = #tpu.pipeline_mode<synchronous>, transform_indices = @transform_1, window_bounds = array<i64: 1, 128>}, {pipeline_mode = #tpu.pipeline_mode<synchronous>, transform_indices = @transform_2, window_bounds = array<i64: 128, 512>}, {pipeline_mode = #tpu.pipeline_mode<synchronous>, transform_indices = @transform_3, window_bounds = array<i64: 128, 128>}, {pipeline_mode = #tpu.pipeline_mode<synchronous>, transform_indices = @transform_4, window_bounds = array<i64: 128, 128>}, {pipeline_mode = #tpu.pipeline_mode<synchronous>, transform_indices = @transform_5, window_bounds = array<i64: 1, 128>}, {pipeline_mode = #tpu.pipeline_mode<synchronous>, transform_indices = @transform_6, window_bounds = array<i64: 128, 512>}, {pipeline_mode = #tpu.pipeline_mode<synchronous>, transform_indices = @transform_7, window_bounds = array<i64: 256, 128>}, {pipeline_mode = #tpu.pipeline_mode<synchronous>, transform_indices = @transform_8, window_bounds = array<i64: 32, 128>}, {pipeline_mode = #tpu.pipeline_mode<synchronous>, transform_indices = @transform_9, window_bounds = array<i64: 32, 128>}, {pipeline_mode = #tpu.pipeline_mode<synchronous>, transform_indices = @transform_10, window_bounds = array<i64: 32, 32>}, {pipeline_mode = #tpu.pipeline_mode<synchronous>, transform_indices = @transform_11, window_bounds = array<i64: 2, 16, 128>}]} {
    %c0 = arith.constant 0 : index
    %c0_0 = arith.constant 0 : index
    %c0_1 = arith.constant 0 : index
    %0 = vector.load %arg1[%c0, %c0_0, %c0_1] : memref<2x16x128xf32, #tpu.memory_space<vmem>>, vector<2x16x128xf32>
    %1 = vector.shape_cast %0 : vector<2x16x128xf32> to vector<32x128xf32>
    %c0_2 = arith.constant 0 : index
    %c0_3 = arith.constant 0 : index
    %2 = vector.load %arg2[%c0_2, %c0_3] : memref<1x128xf32, #tpu.memory_space<vmem>>, vector<1x128xf32>
    %3 = arith.mulf %1, %1 : vector<32x128xf32>
    %cst = arith.constant dense<0.000000e+00> : vector<32xf32>
    %4 = vector.multi_reduction <add>, %3, %cst [1] : vector<32x128xf32> to vector<32xf32>
    %5 = vector.shape_cast %4 : vector<32xf32> to vector<32x1xf32>
    %cst_4 = arith.constant 1.280000e+02 : f32
    %6 = vector.broadcast %cst_4 : f32 to vector<32x1xf32>
    %7 = arith.divf %5, %6 : vector<32x1xf32>
    %cst_5 = arith.constant 9.99999997E-7 : f32
    %8 = vector.broadcast %cst_5 : f32 to vector<32x1xf32>
    %9 = arith.addf %7, %8 : vector<32x1xf32>
    %10 = math.rsqrt %9 : vector<32x1xf32>
    %11 = vector.broadcast %10 : vector<32x1xf32> to vector<32x128xf32>
    %12 = arith.mulf %1, %11 : vector<32x128xf32>
    %13 = vector.broadcast %2 : vector<1x128xf32> to vector<32x128xf32>
    %14 = arith.mulf %12, %13 : vector<32x128xf32>
    %15 = arith.truncf %14 : vector<32x128xf32> to vector<32x128xbf16>
    %c0_6 = arith.constant 0 : index
    %c0_7 = arith.constant 0 : index
    %16 = vector.load %arg3[%c0_6, %c0_7] : memref<128x512xbf16, #tpu.memory_space<vmem>>, vector<128x512xbf16>
    %cst_8 = arith.constant dense<0.000000e+00> : vector<32x512xf32>
    %17 = tpu.matmul %15, %16, %cst_8 {dimension_numbers = #tpu.dot_dimension_numbers<[1], [0], [0], [1], [0, 0, 1, 1], [], []>} : vector<32x128xbf16>, vector<128x512xbf16>, vector<32x512xf32> -> vector<32x512xf32>
    %c0_9 = arith.constant 0 : index
    %c0_10 = arith.constant 0 : index
    %18 = vector.load %arg4[%c0_9, %c0_10] : memref<128x128xbf16, #tpu.memory_space<vmem>>, vector<128x128xbf16>
    %cst_11 = arith.constant dense<0.000000e+00> : vector<32x128xf32>
    %19 = tpu.matmul %15, %18, %cst_11 {dimension_numbers = #tpu.dot_dimension_numbers<[1], [0], [0], [1], [0, 0, 1, 1], [], []>} : vector<32x128xbf16>, vector<128x128xbf16>, vector<32x128xf32> -> vector<32x128xf32>
    %c0_12 = arith.constant 0 : index
    %c0_13 = arith.constant 0 : index
    %20 = vector.load %arg9[%c0_12, %c0_13] : memref<32x128xf32, #tpu.memory_space<vmem>>, vector<32x128xf32>
    %c0_14 = arith.constant 0 : index
    %c0_15 = arith.constant 0 : index
    %21 = vector.load %arg10[%c0_14, %c0_15] : memref<32x128xf32, #tpu.memory_space<vmem>>, vector<32x128xf32>
    %22 = vector.extract_strided_slice %17 {offsets = [0, 0], sizes = [32, 128], strides = [1, 1]} : vector<32x512xf32> to vector<32x128xf32>
    %23 = arith.mulf %22, %20 : vector<32x128xf32>
    %24 = vector.extract_strided_slice %17 {offsets = [0, 128], sizes = [32, 128], strides = [1, 1]} : vector<32x512xf32> to vector<32x128xf32>
    %25 = arith.mulf %24, %21 : vector<32x128xf32>
    %26 = arith.addf %23, %25 : vector<32x128xf32>
    %cst_16 = arith.constant 0.176776692 : f32
    %27 = vector.broadcast %cst_16 : f32 to vector<32x128xf32>
    %28 = arith.mulf %26, %27 : vector<32x128xf32>
    %29 = arith.truncf %28 : vector<32x128xf32> to vector<32x128xbf16>
    %30 = vector.extract_strided_slice %17 {offsets = [0, 256], sizes = [32, 128], strides = [1, 1]} : vector<32x512xf32> to vector<32x128xf32>
    %31 = arith.mulf %30, %20 : vector<32x128xf32>
    %32 = vector.extract_strided_slice %17 {offsets = [0, 384], sizes = [32, 128], strides = [1, 1]} : vector<32x512xf32> to vector<32x128xf32>
    %33 = arith.mulf %32, %21 : vector<32x128xf32>
    %34 = arith.addf %31, %33 : vector<32x128xf32>
    %35 = arith.truncf %34 : vector<32x128xf32> to vector<32x128xbf16>
    %36 = arith.truncf %19 : vector<32x128xf32> to vector<32x128xbf16>
    %37 = vector.extract_strided_slice %29 {offsets = [0, 0], sizes = [32, 32], strides = [1, 1]} : vector<32x128xbf16> to vector<32x32xbf16>
    %38 = vector.extract_strided_slice %29 {offsets = [0, 32], sizes = [32, 32], strides = [1, 1]} : vector<32x128xbf16> to vector<32x32xbf16>
    %39 = vector.extract_strided_slice %29 {offsets = [0, 64], sizes = [32, 32], strides = [1, 1]} : vector<32x128xbf16> to vector<32x32xbf16>
    %40 = vector.extract_strided_slice %29 {offsets = [0, 96], sizes = [32, 32], strides = [1, 1]} : vector<32x128xbf16> to vector<32x32xbf16>
    %41 = vector.shape_cast %37 : vector<32x32xbf16> to vector<1x32x32xbf16>
    %42 = vector.shape_cast %38 : vector<32x32xbf16> to vector<1x32x32xbf16>
    %43 = vector.shape_cast %39 : vector<32x32xbf16> to vector<1x32x32xbf16>
    %44 = vector.shape_cast %40 : vector<32x32xbf16> to vector<1x32x32xbf16>
    %45 = tpu.concatenate %41, %42, %43, %44 in 0 : vector<1x32x32xbf16>, vector<1x32x32xbf16>, vector<1x32x32xbf16>, vector<1x32x32xbf16> -> vector<4x32x32xbf16>
    %46 = vector.extract_strided_slice %35 {offsets = [0, 0], sizes = [32, 32], strides = [1, 1]} : vector<32x128xbf16> to vector<32x32xbf16>
    %47 = vector.extract_strided_slice %35 {offsets = [0, 32], sizes = [32, 32], strides = [1, 1]} : vector<32x128xbf16> to vector<32x32xbf16>
    %48 = vector.extract_strided_slice %35 {offsets = [0, 64], sizes = [32, 32], strides = [1, 1]} : vector<32x128xbf16> to vector<32x32xbf16>
    %49 = vector.extract_strided_slice %35 {offsets = [0, 96], sizes = [32, 32], strides = [1, 1]} : vector<32x128xbf16> to vector<32x32xbf16>
    %50 = vector.shape_cast %46 : vector<32x32xbf16> to vector<1x32x32xbf16>
    %51 = vector.shape_cast %47 : vector<32x32xbf16> to vector<1x32x32xbf16>
    %52 = vector.shape_cast %48 : vector<32x32xbf16> to vector<1x32x32xbf16>
    %53 = vector.shape_cast %49 : vector<32x32xbf16> to vector<1x32x32xbf16>
    %54 = tpu.concatenate %50, %51, %52, %53 in 0 : vector<1x32x32xbf16>, vector<1x32x32xbf16>, vector<1x32x32xbf16>, vector<1x32x32xbf16> -> vector<4x32x32xbf16>
    %55 = vector.extract_strided_slice %36 {offsets = [0, 0], sizes = [32, 32], strides = [1, 1]} : vector<32x128xbf16> to vector<32x32xbf16>
    %56 = vector.extract_strided_slice %36 {offsets = [0, 32], sizes = [32, 32], strides = [1, 1]} : vector<32x128xbf16> to vector<32x32xbf16>
    %57 = vector.extract_strided_slice %36 {offsets = [0, 64], sizes = [32, 32], strides = [1, 1]} : vector<32x128xbf16> to vector<32x32xbf16>
    %58 = vector.extract_strided_slice %36 {offsets = [0, 96], sizes = [32, 32], strides = [1, 1]} : vector<32x128xbf16> to vector<32x32xbf16>
    %59 = vector.shape_cast %55 : vector<32x32xbf16> to vector<1x32x32xbf16>
    %60 = vector.shape_cast %56 : vector<32x32xbf16> to vector<1x32x32xbf16>
    %61 = vector.shape_cast %57 : vector<32x32xbf16> to vector<1x32x32xbf16>
    %62 = vector.shape_cast %58 : vector<32x32xbf16> to vector<1x32x32xbf16>
    %63 = tpu.concatenate %59, %60, %61, %62 in 0 : vector<1x32x32xbf16>, vector<1x32x32xbf16>, vector<1x32x32xbf16>, vector<1x32x32xbf16> -> vector<4x32x32xbf16>
    "tpu.trace_start"() <{level = 10 : i32, message = "hqd,hkd->hqk"}> : () -> ()
    %cst_17 = arith.constant dense<0.000000e+00> : vector<4x32x32xf32>
    %64 = tpu.matmul %45, %54, %cst_17 {dimension_numbers = #tpu.dot_dimension_numbers<[2], [2], [1], [1], [0, 0, 0, 1, 1, 1], [0], [0]>} : vector<4x32x32xbf16>, vector<4x32x32xbf16>, vector<4x32x32xf32> -> vector<4x32x32xf32>
    "tpu.trace_stop"() : () -> ()
    %c0_18 = arith.constant 0 : index
    %c0_19 = arith.constant 0 : index
    %65 = vector.load %arg11[%c0_18, %c0_19] : memref<32x32xf32, #tpu.memory_space<vmem>>, vector<32x32xf32>
    %66 = vector.shape_cast %65 : vector<32x32xf32> to vector<1x32x32xf32>
    %67 = vector.broadcast %66 : vector<1x32x32xf32> to vector<4x32x32xf32>
    %68 = arith.addf %64, %67 : vector<4x32x32xf32>
    %cst_20 = arith.constant dense<0xFF800000> : vector<4x32xf32>
    %69 = vector.multi_reduction <maximumf>, %68, %cst_20 [2] : vector<4x32x32xf32> to vector<4x32xf32>
    %70 = vector.shape_cast %69 : vector<4x32xf32> to vector<4x32x1xf32>
    %71 = vector.broadcast %70 : vector<4x32x1xf32> to vector<4x32x32xf32>
    %72 = arith.subf %68, %71 : vector<4x32x32xf32>
    %73 = math.exp %72 : vector<4x32x32xf32>
    %cst_21 = arith.constant dense<0.000000e+00> : vector<4x32xf32>
    %74 = vector.multi_reduction <add>, %73, %cst_21 [2] : vector<4x32x32xf32> to vector<4x32xf32>
    %75 = vector.shape_cast %74 : vector<4x32xf32> to vector<4x32x1xf32>
    %76 = arith.truncf %73 : vector<4x32x32xf32> to vector<4x32x32xbf16>
    "tpu.trace_start"() <{level = 10 : i32, message = "hqk,hkd->hqd"}> : () -> ()
    %cst_22 = arith.constant dense<0.000000e+00> : vector<4x32x32xf32>
    %77 = tpu.matmul %76, %63, %cst_22 {dimension_numbers = #tpu.dot_dimension_numbers<[2], [1], [1], [2], [0, 0, 0, 1, 1, 2], [0], [0]>} : vector<4x32x32xbf16>, vector<4x32x32xbf16>, vector<4x32x32xf32> -> vector<4x32x32xf32>
    "tpu.trace_stop"() : () -> ()
    %78 = tpu.reciprocal %75 {approx = true} : vector<4x32x1xf32> -> vector<4x32x1xf32>
    %79 = vector.broadcast %78 : vector<4x32x1xf32> to vector<4x32x32xf32>
    %80 = arith.mulf %77, %79 : vector<4x32x32xf32>
    %81 = vector.extract_strided_slice %80 {offsets = [0, 0, 0], sizes = [1, 32, 32], strides = [1, 1, 1]} : vector<4x32x32xf32> to vector<1x32x32xf32>
    %82 = vector.shape_cast %81 : vector<1x32x32xf32> to vector<32x32xf32>
    %83 = vector.extract_strided_slice %80 {offsets = [1, 0, 0], sizes = [1, 32, 32], strides = [1, 1, 1]} : vector<4x32x32xf32> to vector<1x32x32xf32>
    %84 = vector.shape_cast %83 : vector<1x32x32xf32> to vector<32x32xf32>
    %85 = vector.extract_strided_slice %80 {offsets = [2, 0, 0], sizes = [1, 32, 32], strides = [1, 1, 1]} : vector<4x32x32xf32> to vector<1x32x32xf32>
    %86 = vector.shape_cast %85 : vector<1x32x32xf32> to vector<32x32xf32>
    %87 = vector.extract_strided_slice %80 {offsets = [3, 0, 0], sizes = [1, 32, 32], strides = [1, 1, 1]} : vector<4x32x32xf32> to vector<1x32x32xf32>
    %88 = vector.shape_cast %87 : vector<1x32x32xf32> to vector<32x32xf32>
    %89 = tpu.concatenate %82, %84, %86, %88 in 1 : vector<32x32xf32>, vector<32x32xf32>, vector<32x32xf32>, vector<32x32xf32> -> vector<32x128xf32>
    %90 = arith.truncf %89 : vector<32x128xf32> to vector<32x128xbf16>
    %c0_23 = arith.constant 0 : index
    %c0_24 = arith.constant 0 : index
    %91 = vector.load %arg5[%c0_23, %c0_24] : memref<128x128xbf16, #tpu.memory_space<vmem>>, vector<128x128xbf16>
    %cst_25 = arith.constant dense<0.000000e+00> : vector<32x128xf32>
    %92 = tpu.matmul %90, %91, %cst_25 {dimension_numbers = #tpu.dot_dimension_numbers<[1], [0], [0], [1], [0, 0, 1, 1], [], []>} : vector<32x128xbf16>, vector<128x128xbf16>, vector<32x128xf32> -> vector<32x128xf32>
    %93 = arith.addf %1, %92 : vector<32x128xf32>
    %c0_26 = arith.constant 0 : index
    %c0_27 = arith.constant 0 : index
    %94 = vector.load %arg6[%c0_26, %c0_27] : memref<1x128xf32, #tpu.memory_space<vmem>>, vector<1x128xf32>
    %95 = arith.mulf %93, %93 : vector<32x128xf32>
    %cst_28 = arith.constant dense<0.000000e+00> : vector<32xf32>
    %96 = vector.multi_reduction <add>, %95, %cst_28 [1] : vector<32x128xf32> to vector<32xf32>
    %97 = vector.shape_cast %96 : vector<32xf32> to vector<32x1xf32>
    %cst_29 = arith.constant 1.280000e+02 : f32
    %98 = vector.broadcast %cst_29 : f32 to vector<32x1xf32>
    %99 = arith.divf %97, %98 : vector<32x1xf32>
    %cst_30 = arith.constant 9.99999997E-7 : f32
    %100 = vector.broadcast %cst_30 : f32 to vector<32x1xf32>
    %101 = arith.addf %99, %100 : vector<32x1xf32>
    %102 = math.rsqrt %101 : vector<32x1xf32>
    %103 = vector.broadcast %102 : vector<32x1xf32> to vector<32x128xf32>
    %104 = arith.mulf %93, %103 : vector<32x128xf32>
    %105 = vector.broadcast %94 : vector<1x128xf32> to vector<32x128xf32>
    %106 = arith.mulf %104, %105 : vector<32x128xf32>
    %107 = arith.truncf %106 : vector<32x128xf32> to vector<32x128xbf16>
    %c0_31 = arith.constant 0 : index
    %c0_32 = arith.constant 0 : index
    %108 = vector.load %arg7[%c0_31, %c0_32] : memref<128x512xbf16, #tpu.memory_space<vmem>>, vector<128x512xbf16>
    %cst_33 = arith.constant dense<0.000000e+00> : vector<32x512xf32>
    %109 = tpu.matmul %107, %108, %cst_33 {dimension_numbers = #tpu.dot_dimension_numbers<[1], [0], [0], [1], [0, 0, 1, 1], [], []>} : vector<32x128xbf16>, vector<128x512xbf16>, vector<32x512xf32> -> vector<32x512xf32>
    %110 = vector.extract_strided_slice %109 {offsets = [0, 0], sizes = [32, 256], strides = [1, 1]} : vector<32x512xf32> to vector<32x256xf32>
    %111 = vector.extract_strided_slice %109 {offsets = [0, 256], sizes = [32, 256], strides = [1, 1]} : vector<32x512xf32> to vector<32x256xf32>
    %112 = arith.negf %110 : vector<32x256xf32>
    %113 = math.exp %112 : vector<32x256xf32>
    %cst_34 = arith.constant 1.000000e+00 : f32
    %114 = vector.broadcast %cst_34 : f32 to vector<32x256xf32>
    %115 = arith.addf %114, %113 : vector<32x256xf32>
    %116 = arith.divf %114, %115 : vector<32x256xf32>
    %117 = arith.mulf %110, %116 : vector<32x256xf32>
    %118 = arith.mulf %117, %111 : vector<32x256xf32>
    %119 = arith.truncf %118 : vector<32x256xf32> to vector<32x256xbf16>
    %c0_35 = arith.constant 0 : index
    %c0_36 = arith.constant 0 : index
    %120 = vector.load %arg8[%c0_35, %c0_36] : memref<256x128xbf16, #tpu.memory_space<vmem>>, vector<256x128xbf16>
    %cst_37 = arith.constant dense<0.000000e+00> : vector<32x128xf32>
    %121 = tpu.matmul %119, %120, %cst_37 {dimension_numbers = #tpu.dot_dimension_numbers<[1], [0], [0], [1], [0, 0, 1, 1], [], []>} : vector<32x256xbf16>, vector<256x128xbf16>, vector<32x128xf32> -> vector<32x128xf32>
    %122 = arith.addf %93, %121 : vector<32x128xf32>
    %123 = vector.shape_cast %122 : vector<32x128xf32> to vector<2x16x128xf32>
    %c0_38 = arith.constant 0 : index
    %c0_39 = arith.constant 0 : index
    %c0_40 = arith.constant 0 : index
    %124 = vector.load %arg12[%c0_38, %c0_39, %c0_40] : memref<2x16x128xf32, #tpu.memory_space<vmem>>, vector<2x16x128xf32>
    tpu.vector_store %arg12[%c0_38, %c0_39, %c0_40], %123 {strides = array<i32>} : memref<2x16x128xf32, #tpu.memory_space<vmem>>, vector<2x16x128xf32>,
    return
  }
  func.func @transform_0(%arg0: i32) -> (i32, i32, i32) {
    %c0_i32 = arith.constant 0 : i32
    %c0_i32_0 = arith.constant 0 : i32
    %c0_i32_1 = arith.constant 0 : i32
    %c0_i32_2 = arith.constant 0 : i32
    return %c0_i32, %c0_i32_0, %c0_i32_1 : i32, i32, i32
  }
  func.func @transform_1(%arg0: i32) -> (i32, i32) {
    %c0_i32 = arith.constant 0 : i32
    %c0_i32_0 = arith.constant 0 : i32
    %c0_i32_1 = arith.constant 0 : i32
    return %c0_i32, %c0_i32_0 : i32, i32
  }
  func.func @transform_2(%arg0: i32) -> (i32, i32) {
    %c0_i32 = arith.constant 0 : i32
    %c0_i32_0 = arith.constant 0 : i32
    %c0_i32_1 = arith.constant 0 : i32
    return %c0_i32, %c0_i32_0 : i32, i32
  }
  func.func @transform_3(%arg0: i32) -> (i32, i32) {
    %c0_i32 = arith.constant 0 : i32
    %c0_i32_0 = arith.constant 0 : i32
    %c0_i32_1 = arith.constant 0 : i32
    return %c0_i32, %c0_i32_0 : i32, i32
  }
  func.func @transform_4(%arg0: i32) -> (i32, i32) {
    %c0_i32 = arith.constant 0 : i32
    %c0_i32_0 = arith.constant 0 : i32
    %c0_i32_1 = arith.constant 0 : i32
    return %c0_i32, %c0_i32_0 : i32, i32
  }
  func.func @transform_5(%arg0: i32) -> (i32, i32) {
    %c0_i32 = arith.constant 0 : i32
    %c0_i32_0 = arith.constant 0 : i32
    %c0_i32_1 = arith.constant 0 : i32
    return %c0_i32, %c0_i32_0 : i32, i32
  }
  func.func @transform_6(%arg0: i32) -> (i32, i32) {
    %c0_i32 = arith.constant 0 : i32
    %c0_i32_0 = arith.constant 0 : i32
    %c0_i32_1 = arith.constant 0 : i32
    return %c0_i32, %c0_i32_0 : i32, i32
  }
  func.func @transform_7(%arg0: i32) -> (i32, i32) {
    %c0_i32 = arith.constant 0 : i32
    %c0_i32_0 = arith.constant 0 : i32
    %c0_i32_1 = arith.constant 0 : i32
    return %c0_i32, %c0_i32_0 : i32, i32
  }
  func.func @transform_8(%arg0: i32) -> (i32, i32) {
    %c0_i32 = arith.constant 0 : i32
    %c0_i32_0 = arith.constant 0 : i32
    %c0_i32_1 = arith.constant 0 : i32
    return %c0_i32, %c0_i32_0 : i32, i32
  }
  func.func @transform_9(%arg0: i32) -> (i32, i32) {
    %c0_i32 = arith.constant 0 : i32
    %c0_i32_0 = arith.constant 0 : i32
    %c0_i32_1 = arith.constant 0 : i32
    return %c0_i32, %c0_i32_0 : i32, i32
  }
  func.func @transform_10(%arg0: i32) -> (i32, i32) {
    %c0_i32 = arith.constant 0 : i32
    %c0_i32_0 = arith.constant 0 : i32
    %c0_i32_1 = arith.constant 0 : i32
    return %c0_i32, %c0_i32_0 : i32, i32
  }
  func.func @transform_11(%arg0: i32) -> (i32, i32, i32) {
    %c0_i32 = arith.constant 0 : i32
    %c0_i32_0 = arith.constant 0 : i32
    %c0_i32_1 = arith.constant 0 : i32
    %c0_i32_2 = arith.constant 0 : i32
    return %c0_i32, %c0_i32_0, %c0_i32_1 : i32, i32, i32
  }
}

</mosaic_0001>

<bundles_post_ra>
// kernel: transformer_block.1
= control target key start
LH: loop header
LB: loop body
LE: loop exit
PB: predicated region body
PF: predicated region fallthrough
CT: control target
= control target key end

     0   :  { %16 = vsyncpa [#allocation3], 0  ;;  %s3632_s0 = inlined_call_operand.hbm [shape: f32[2,16,128], index: 0, kind: input, shape index: {}]   ;;  %s3633_s1 = inlined_call_operand.hbm [shape: f32[1,128], index: 1, kind: input, shape index: {}]   ;;  %s3634_s2 = inlined_call_operand.hbm [shape: bf16[128,512], index: 2, kind: input, shape index: {}]   ;;  %s3635_s3 = inlined_call_operand.hbm [shape: bf16[128,128], index: 3, kind: input, shape index: {}]   ;;  %s3636_s4 = inlined_call_operand.hbm [shape: bf16[128,128], index: 4, kind: input, shape index: {}]   ;;  %s3637_s5 = inlined_call_operand.vmem [shape: f32[1,128], index: 5, kind: input, shape index: {}]   ;;  %s3638_s6 = inlined_call_operand.hbm [shape: bf16[128,512], index: 6, kind: input, shape index: {}]   ;;  %s3639_s7 = inlined_call_operand.hbm [shape: bf16[256,128], index: 7, kind: input, shape index: {}]   ;;  %s3640_s8 = inlined_call_operand.hbm [shape: f32[32,128], index: 8, kind: input, shape index: {}]   ;;  %s3641_s9 = inlined_call_operand.hbm [shape: f32[32,128], index: 9, kind: input, shape index: {}]   ;;  %s3642_s10 = inlined_call_operand.hbm [shape: f32[32,32], index: 10, kind: input, shape index: {}]   ;;  %s3643_s11 = inlined_call_operand.hbm [shape: f32[2,16,128], index: 11, kind: output, shape index: {}]  }
   0x1   :  { %17 = vsyncpa [#allocation6], 0 }
   0x2   :  { %18 = vsyncpa [#allocation9], 0 }
   0x3   :  { %19 = vsyncpa [#allocation12], 0 }
   0x4   :  { %20 = vsyncpa [#allocation15], 0 }
   0x5   :  { %21 = vsyncpa [#allocation18], 0  ;;  %s41_s19 = sshll.u32 %s3633_s1, 4  ;;  %s42_s19 = int_to_ptr.hbm [resolvable:$true] %s41_s19 }
   0x6   :  { %22 = vsyncpa [#allocation4], 0  ;;  %s3118_s20 = smov [#allocation5]   ;;  %s64_s24 = sshll.u32 %s3635_s3, 4  ;;  %s65_s24 = int_to_ptr.hbm [resolvable:$true] %s64_s24 }
   0x7   :  { %s43_s21 = sshll.u32 %s3118_s20, 4  ;;  %s3119_s25 = smov [#allocation8]   ;;  %s44_s21 = int_to_ptr.vmem [resolvable:$true] %s43_s21 }
   0x8   :  { %46 = dma.hbm_to_vmem [thread:$0]  %s42_s19, 16, %s44_s21, [#allocation6]  }
   0x9   :  { %s66_s26 = sshll.u32 %s3119_s25, 4  ;;  %s3120_s27 = smov 64   ;;  %s67_s26 = int_to_ptr.vmem [resolvable:$true] %s66_s26 }
   0xa   :  { %s3121_s28 = smov 4   ;;  %s92_s30 = sshll.u32 %s3638_s6, 4  ;;  %s93_s30 = int_to_ptr.hbm [resolvable:$true] %s92_s30 }
   0xb   :  { %72 = dma.hbm_to_vmem [thread:$0]  %s65_s24, 1024, %s67_s26, [#allocation9], %s3120_s27, %s3120_s27, %s3121_s28  }
   0xc   :  { %s3122_s12 = smov [#allocation11]   ;;  %s3123_s3 = smov 256  }
   0xd   :  { %s94_s13 = sshll.u32 %s3122_s12, 4  ;;  %s3124_s14 = smov 16   ;;  %s95_s13 = int_to_ptr.vmem [resolvable:$true] %s94_s13 }
   0xe   :  { %100 = dma.hbm_to_vmem [thread:$0]  %s93_s30, 4096, %s95_s13, [#allocation12], %s3123_s3, %s3123_s3, %s3124_s14  }
   0xf   :  { %s118_s17 = sshll.u32 %s3640_s8, 4  ;;  %s3125_s18 = smov [#allocation14]   ;;  %s119_s17 = int_to_ptr.hbm [resolvable:$true] %s118_s17 }
  0x10   :  { %s120_s19 = sshll.u32 %s3125_s18, 4  ;;  %s27_s22 = sshll.u32 %s3632_s0, 4  ;;  %s121_s19 = int_to_ptr.vmem [resolvable:$true] %s120_s19  ;;  %s28_s22 = int_to_ptr.hbm [resolvable:$true] %s27_s22 }
  0x11   :  { %s3126_s6 = smov 128   ;;  %s3127_s23 = smov 8  }
  0x12   :  { %126 = dma.hbm_to_vmem [thread:$0]  %s119_s17, 512, %s121_s19, [#allocation15], %s3126_s6, %s3126_s6, %s3127_s23  }
  0x13   :  { %s51_s26 = sshll.u32 %s3634_s2, 4  ;;  %s3128_s8 = smov [#allocation2]   ;;  %s52_s26 = int_to_ptr.hbm [resolvable:$true] %s51_s26 }
  0x14   :  { %s29_s1 = sshll.u32 %s3128_s8, 4  ;;  %s3129_s0 = smov [#allocation7]   ;;  %s30_s1 = int_to_ptr.vmem [resolvable:$true] %s29_s1 }
  0x15   :  { %35 = dma.hbm_to_vmem [thread:$0]  %s28_s22, 512, %s30_s1, [#allocation3], %s3126_s6, %s3126_s6, %s3127_s23  }
  0x16   :  { %s53_s29 = sshll.u32 %s3129_s0, 4  ;;  %s77_s13 = sshll.u32 %s3636_s4, 4  ;;  %s54_s29 = int_to_ptr.vmem [resolvable:$true] %s53_s29  ;;  %s78_s13 = int_to_ptr.hbm [resolvable:$true] %s77_s13 }
  0x17   :  { %59 = dma.hbm_to_vmem [thread:$0]  %s52_s26, 4096, %s54_s29, [#allocation6], %s3123_s3, %s3123_s3, %s3124_s14  }
  0x18   :  { %s105_s2 = sshll.u32 %s3639_s7, 4  ;;  %s3130_s17 = smov [#allocation10]   ;;  %s106_s2 = int_to_ptr.hbm [resolvable:$true] %s105_s2 }
  0x19   :  { %s79_s18 = sshll.u32 %s3130_s17, 4  ;;  %s3131_s19 = smov [#allocation13]   ;;  %s80_s18 = int_to_ptr.vmem [resolvable:$true] %s79_s18 }
  0x1a   :  { %85 = dma.hbm_to_vmem [thread:$0]  %s78_s13, 1024, %s80_s18, [#allocation9], %s3120_s27, %s3120_s27, %s3121_s28  }
  0x1b   :  { %s107_s20 = sshll.u32 %s3131_s19, 4  ;;  %s131_s4 = sshll.u32 %s3641_s9, 4  ;;  %s108_s20 = int_to_ptr.vmem [resolvable:$true] %s107_s20  ;;  %s132_s4 = int_to_ptr.hbm [resolvable:$true] %s131_s4 }
  0x1c   :  { %113 = dma.hbm_to_vmem [thread:$0]  %s106_s2, 2048, %s108_s20, [#allocation12], %s3120_s27, %s3120_s27, %s3121_s28  }
  0x1d   :  { %s144_s14 = sshll.u32 %s3642_s10, 4  ;;  %s3132_s24 = smov [#allocation16]   ;;  %s145_s14 = int_to_ptr.hbm [resolvable:$true] %s144_s14 }
  0x1e   :  { %s133_s25 = sshll.u32 %s3132_s24, 4  ;;  %s3133_s26 = smov [#allocation17]   ;;  %s134_s25 = int_to_ptr.vmem [resolvable:$true] %s133_s25 }
  0x1f   :  { %139 = dma.hbm_to_vmem [thread:$0]  %s132_s4, 512, %s134_s25, [#allocation15], %s3126_s6, %s3126_s6, %s3127_s23  }
  0x20   :  { %s146_s9 = sshll.u32 %s3133_s26, 4  ;;  %s147_s9 = int_to_ptr.vmem [resolvable:$true] %s146_s9 }
  0x21   :  { %152 = dma.hbm_to_vmem [thread:$0]  %s145_s14, 512, %s147_s9, [#allocation18], %s3126_s6, %s3126_s6, %s3127_s23  }
  0x22   :  { %3104 = dma.done.wait [#allocation3], 512  }
  0x23   :  { %3105 = vsyncadd [#allocation3], 4294966784 }
  0x24   :  { %3106 = dma.done.wait [#allocation6], 4112  }
  0x25   :  { %3107 = vsyncadd [#allocation6], 4294963184 }
  0x26   :  { %3108 = dma.done.wait [#allocation9], 2048  }
  0x27   :  { %3109 = vsyncadd [#allocation9], 4294965248 }
  0x28   :  { %3110 = dma.done.wait [#allocation12], 6144  }
  0x29   :  { %3111 = vsyncadd [#allocation12], 4294961152 }
  0x2a   :  { %3112 = dma.done.wait [#allocation15], 1024  }
  0x2b   :  { %3113 = vsyncadd [#allocation15], 4294966272 }
  0x2c   :  { %3114 = dma.done.wait [#allocation18], 512  }
  0x2d   :  { %3115 = vsyncadd [#allocation18], 4294966784  ;;  %v3249_v0 = vld [vmem:[#allocation2 + $0x10] sm:$0xff]  ;;  %v3251_v1 = vld [vmem:[#allocation2] sm:$0xff]  ;;  %v3134_v11 = vmov 128.0   ;;  %s3135_s10 = smov 96  }
  0x2e   :  { %v201_v2 = vmul.f32 %v3249_v0, %v3249_v0  ;;  %v199_v3 = vmul.f32 %v3251_v1, %v3251_v1  ;;  %v3257_v4 = vld [vmem:[#allocation2 + $0x18] sm:$0xff]  ;;  %v3259_v5 = vld [vmem:[#allocation2 + $0x8] sm:$0xff]  ;;  %v2280_v8 = vld [vmem:[#allocation7 + $0xe0] sm:$0xf]  ;;  %2722 = vrcp.f32 %v3134_v11  ;;  %vm778_vm13 = vcmask 261120   ;;  %s3136_s28 = smov 32  }
  0x2f   :  { %v202_v6 = vmul.f32 %v3257_v4, %v3257_v4  ;;  %v200_v7 = vmul.f32 %v3259_v5, %v3259_v5  ;;  %v2604_v9 = vld [vmem:[#allocation7 + $0xec] sm:$0xf0]  ;;  %v2602_v10 = vld [vmem:[#allocation7 + $0xe4] sm:$0xf]  ;;  %v2282_v13 = vld [vmem:[#allocation7 + $0xf0] sm:$0xf0] }
  0x30   :  { %207 = vadd.xlane.f32.xlu1 %v201_v2  ;;  %203 = vadd.xlane.f32.xlu0 %v199_v3  ;;  %v2281_v12 = vor.u32 %v2604_v9, %v2280_v8  ;;  %v2288_v14 = vld [vmem:[#allocation7 + $0xe8] sm:$0xf]  ;;  %v2605_v15 = vld [vmem:[#allocation7 + $0xf4] sm:$0xf0]  ;;  %v2285_v16 = vor.u32 %v2602_v10, %v2282_v13  ;;  %v2603_v18 = vld [vmem:[#allocation7 + $0xec] sm:$0xf] }
  0x31   :  { %v2289_v17 = vor.u32 %v2605_v15, %v2288_v14  ;;  %v2290_v19 = vld [vmem:[#allocation7 + $0xf8] sm:$0xf0]  ;;  %v2264_v21 = vld [vmem:[#allocation7 + $0xc0] sm:$0xf]  ;;  %v2600_v22 = vld [vmem:[#allocation7 + $0xcc] sm:$0xf0] }
  0x32   :  { %471 = vmatpush.bf16.msra.mxu0 %v2281_v12  ;;  %v2293_v20 = vor.u32 %v2603_v18, %v2290_v19  ;;  %490 = vmatpush.bf16.msra.mxu1 %v2285_v16  ;;  %v2598_v23 = vld [vmem:[#allocation7 + $0xc4] sm:$0xf]  ;;  %v2265_v24 = vor.u32 %v2600_v22, %v2264_v21  ;;  %v2266_v25 = vld [vmem:[#allocation7 + $0xd0] sm:$0xf0]  ;;  %v2272_v26 = vld [vmem:[#allocation7 + $0xc8] sm:$0xf] }
  0x33   :  { %509 = vmatpush.bf16.msra.mxu2 %v2289_v17  ;;  %v2601_v27 = vld [vmem:[#allocation7 + $0xd4] sm:$0xf0]  ;;  %v2269_v28 = vor.u32 %v2598_v23, %v2266_v25  ;;  %v2599_v30 = vld [vmem:[#allocation7 + $0xcc] sm:$0xf]  ;;  %v2274_v31 = vld [vmem:[#allocation7 + $0xd8] sm:$0xf0] }
  0x34   :  { %528 = vmatpush.bf16.msra.mxu3 %v2293_v20  ;;  %v2273_v29 = vor.u32 %v2601_v27, %v2272_v26  ;;  %v3265_v32 = vpop.eup %2722  ;;  %v2277_v33 = vor.u32 %v2599_v30, %v2274_v31  ;;  %v2248_v34 = vld [vmem:[#allocation7 + $0xa0] sm:$0xf]  ;;  %v2596_v35 = vld [vmem:[#allocation7 + $0xac] sm:$0xf0]  ;;  %v2594_v36 = vld [vmem:[#allocation7 + $0xa4] sm:$0xf] }
  0x35   :  { %v2249_v37 = vor.u32 %v2596_v35, %v2248_v34  ;;  %v2250_v38 = vld [vmem:[#allocation7 + $0xb0] sm:$0xf0]  ;;  %v2256_v39 = vld [vmem:[#allocation7 + $0xa8] sm:$0xf]  ;;  %v2597_v40 = vld [vmem:[#allocation7 + $0xb4] sm:$0xf0]  ;;  %vm216_vm0 = vweird.f32 %v3265_v32 }
  0x36   :  { %472 = vmatpush.bf16.msra.mxu0 %v2265_v24  ;;  %491 = vmatpush.bf16.msra.mxu1 %v2269_v28  ;;  %v212_v41 = vmul.f32 128.0, %v3265_v32  ;;  %v2253_v42 = vor.u32 %v2594_v36, %v2250_v38  ;;  %v2257_v43 = vor.u32 %v2597_v40, %v2256_v39  ;;  %v2595_v44 = vld [vmem:[#allocation7 + $0xac] sm:$0xf]  ;;  %v2258_v45 = vld [vmem:[#allocation7 + $0xb8] sm:$0xf0]  ;;  %vm1355_vm14 = vcmask 523264  }
  0x37   :  { %510 = vmatpush.bf16.msra.mxu2 %v2273_v29  ;;  %v2261_v46 = vor.u32 %v2595_v44, %v2258_v45  ;;  %v2232_v47 = vld [vmem:[#allocation7 + $0x80] sm:$0xf]  ;;  %v2592_v48 = vld [vmem:[#allocation7 + $0x8c] sm:$0xf0]  ;;  %v2590_v49 = vld [vmem:[#allocation7 + $0x84] sm:$0xf] }
  0x38   :  { %209 = vadd.xlane.f32.xlu1 %v202_v6  ;;  %205 = vadd.xlane.f32.xlu0 %v200_v7  ;;  %v2233_v50 = vor.u32 %v2592_v48, %v2232_v47  ;;  %v2234_v51 = vld [vmem:[#allocation7 + $0x90] sm:$0xf0]  ;;  %v2240_v52 = vld [vmem:[#allocation7 + $0x88] sm:$0xf]  ;;  %v2593_v53 = vld [vmem:[#allocation7 + $0x94] sm:$0xf0] }
  0x39   :  { %529 = vmatpush.bf16.msra.mxu3 %v2277_v33  ;;  %v213_v54 = vsub.f32 1.0, %v212_v41  ;;  %v2237_v55 = vor.u32 %v2590_v49, %v2234_v51  ;;  %v2241_v56 = vor.u32 %v2593_v53, %v2240_v52  ;;  %v2591_v57 = vld [vmem:[#allocation7 + $0x8c] sm:$0xf]  ;;  %v2242_v58 = vld [vmem:[#allocation7 + $0x98] sm:$0xf0]  ;;  %vm1360_vm15 = vcmask 785408  }
  0x3a   :  { %473 = vmatpush.bf16.msra.mxu0 %v2249_v37  ;;  %492 = vmatpush.bf16.msra.mxu1 %v2253_v42  ;;  %v2245_v59 = vor.u32 %v2591_v57, %v2242_v58  ;;  %v2216_v60 = vld [vmem:[#allocation7 + $0x60] sm:$0xf]  ;;  %v2588_v61 = vld [vmem:[#allocation7 + $0x6c] sm:$0xf0]  ;;  %v2586_v62 = vld [vmem:[#allocation7 + $0x64] sm:$0xf] }
  0x3b   :  { %511 = vmatpush.bf16.msra.mxu2 %v2257_v43  ;;  %v2217_v63 = vor.u32 %v2588_v61, %v2216_v60  ;;  %v2218_v2 = vld [vmem:[#allocation7 + $0x70] sm:$0xf0]  ;;  %v2224_v3 = vld [vmem:[#allocation7 + $0x68] sm:$0xf]  ;;  %v2589_v6 = vld [vmem:[#allocation7 + $0x74] sm:$0xf0]  ;;  %v214_v7 = vmul.f32 %v3265_v32, %v213_v54 }
  0x3c   :  { %v2221_v8 = vor.u32 %v2586_v62, %v2218_v2  ;;  %v2225_v9 = vor.u32 %v2589_v6, %v2224_v3  ;;  %v2587_v10 = vld [vmem:[#allocation7 + $0x6c] sm:$0xf]  ;;  %v2226_v11 = vld [vmem:[#allocation7 + $0x78] sm:$0xf0]  ;;  %v2200_v13 = vld [vmem:[#allocation7 + $0x40] sm:$0xf] }
  0x3d   :  { %530 = vmatpush.bf16.msra.mxu3 %v2261_v46  ;;  %v2229_v12 = vor.u32 %v2587_v10, %v2226_v11  ;;  %v2584_v14 = vld [vmem:[#allocation7 + $0x4c] sm:$0xf0]  ;;  %v2582_v15 = vld [vmem:[#allocation7 + $0x44] sm:$0xf]  ;;  %v2202_v17 = vld [vmem:[#allocation7 + $0x50] sm:$0xf0]  ;;  %v215_v20 = vadd.f32 %v3265_v32, %v214_v7 }
  0x3e   :  { %474 = vmatpush.bf16.msra.mxu0 %v2233_v50  ;;  %493 = vmatpush.bf16.msra.mxu1 %v2237_v55  ;;  %v2201_v16 = vor.u32 %v2584_v14, %v2200_v13  ;;  %v2208_v18 = vld [vmem:[#allocation7 + $0x48] sm:$0xf]  ;;  %v2585_v19 = vld [vmem:[#allocation7 + $0x54] sm:$0xf0]  ;;  %v2205_v21 = vor.u32 %v2582_v15, %v2202_v17  ;;  %v2583_v23 = vld [vmem:[#allocation7 + $0x4c] sm:$0xf] }
  0x3f   :  { %512 = vmatpush.bf16.msra.mxu2 %v2241_v56  ;;  %v2209_v22 = vor.u32 %v2585_v19, %v2208_v18  ;;  %v2210_v24 = vld [vmem:[#allocation7 + $0x58] sm:$0xf0]  ;;  %v2184_v26 = vld [vmem:[#allocation7 + $0x20] sm:$0xf]  ;;  %v2580_v27 = vld [vmem:[#allocation7 + $0x2c] sm:$0xf0]  ;;  %v3272_v34 = vsel %vm216_vm0, %v3265_v32, %v215_v20 }
  0x40   :  { %v2213_v25 = vor.u32 %v2583_v23, %v2210_v24  ;;  %v2578_v28 = vld [vmem:[#allocation7 + $0x24] sm:$0xf]  ;;  %v2185_v29 = vor.u32 %v2580_v27, %v2184_v26  ;;  %v2186_v30 = vld [vmem:[#allocation7 + $0x30] sm:$0xf0]  ;;  %v2192_v31 = vld [vmem:[#allocation7 + $0x28] sm:$0xf] }
  0x41   :  { %531 = vmatpush.bf16.msra.mxu3 %v2245_v59  ;;  %v2581_v33 = vld [vmem:[#allocation7 + $0x34] sm:$0xf0]  ;;  %v2189_v35 = vor.u32 %v2578_v28, %v2186_v30  ;;  %v2579_v37 = vld [vmem:[#allocation7 + $0x2c] sm:$0xf]  ;;  %v2194_v38 = vld [vmem:[#allocation7 + $0x38] sm:$0xf0] }
  0x42   :  { %475 = vmatpush.bf16.msra.mxu0 %v2217_v63  ;;  %494 = vmatpush.bf16.msra.mxu1 %v2221_v8  ;;  %v2193_v36 = vor.u32 %v2581_v33, %v2192_v31  ;;  %v2197_v39 = vor.u32 %v2579_v37, %v2194_v38  ;;  %v2168_v42 = vld [vmem:[#allocation7] sm:$0xf]  ;;  %v2576_v43 = vld [vmem:[#allocation7 + $0xc] sm:$0xf0]  ;;  %v2574_v44 = vld [vmem:[#allocation7 + $0x4] sm:$0xf] }
  0x43   :  { %513 = vmatpush.bf16.msra.mxu2 %v2225_v9  ;;  %v2169_v46 = vor.u32 %v2576_v43, %v2168_v42  ;;  %v2170_v47 = vld [vmem:[#allocation7 + $0x10] sm:$0xf0]  ;;  %v2176_v32 = vld [vmem:[#allocation7 + $0x8] sm:$0xf]  ;;  %v2577_v48 = vld [vmem:[#allocation7 + $0x14] sm:$0xf0] }
  0x44   :  { %v2173_v49 = vor.u32 %v2574_v44, %v2170_v47  ;;  %v2177_v50 = vor.u32 %v2577_v48, %v2176_v32  ;;  %v2575_v51 = vld [vmem:[#allocation7 + $0xc] sm:$0xf]  ;;  %v2178_v52 = vld [vmem:[#allocation7 + $0x18] sm:$0xf0]  ;;  %v2612_v60 = vld [vmem:[#allocation8 + $0x30] sm:$0xff]  ;;  %s2148_s30 = sshll.u32 %s3643_s11, 4  ;;  %s2149_s30 = int_to_ptr.hbm [resolvable:$true] %s2148_s30 }
  0x45   :  { %532 = vmatpush.bf16.msra.mxu3 %v2229_v12  ;;  %v2181_v54 = vor.u32 %v2575_v51, %v2178_v52  ;;  %v2613_v56 = vld [vmem:[#allocation8 + $0x38] sm:$0xff]  ;;  %v2611_v6 = vld [vmem:[#allocation8 + $0x28] sm:$0xff]  ;;  %v2610_v9 = vld [vmem:[#allocation8 + $0x20] sm:$0xff] }
  0x46   :  { %476 = vmatpush.bf16.msra.mxu0 %v2201_v16  ;;  %495 = vmatpush.bf16.msra.mxu1 %v2205_v21  ;;  %v2609_v17 = vld [vmem:[#allocation8 + $0x18] sm:$0xff]  ;;  %v2608_v21 = vld [vmem:[#allocation8 + $0x10] sm:$0xff]  ;;  %v2607_v27 = vld [vmem:[#allocation8 + $0x8] sm:$0xff] }
  0x47   :  { %514 = vmatpush.bf16.msra.mxu2 %v2209_v22  ;;  %v2720_v30 = vld [vmem:[#allocation5] ss:$0 sm:$0xff]  ;;  %v2606_v37 = vld [vmem:[#allocation8] sm:$0xff] }
  0x49   :  { %533 = vmatpush.bf16.msra.mxu3 %v2213_v25 }
  0x4a   :  { %477 = vmatpush.bf16.msra.mxu0 %v2185_v29  ;;  %496 = vmatpush.bf16.msra.mxu1 %v2189_v35 }
  0x4b   :  { %515 = vmatpush.bf16.msra.mxu2 %v2193_v36 }
  0x4d   :  { %534 = vmatpush.bf16.msra.mxu3 %v2197_v39 }
  0x4e   :  { %478 = vmatpush.bf16.msra.mxu0 %v2169_v46  ;;  %497 = vmatpush.bf16.msra.mxu1 %v2173_v49  ;;  %v630_v49 = vld [vmem:[#allocation14] sm:$0xff] }
  0x4f   :  { %516 = vmatpush.bf16.msra.mxu2 %v2177_v50  ;;  %v634_v50 = vld [vmem:[#allocation16] sm:$0xff] }
  0x51   :  { %535 = vmatpush.bf16.msra.mxu3 %v2181_v54 }
  0x52   :  { %611 = vmatpush.bf16.msrb.mxu0 %v2613_v56 }
  0x56   :  { %612 = vmatpush.bf16.msrb.mxu0 %v2612_v60 }
  0x5a   :  { %613 = vmatpush.bf16.msrb.mxu0 %v2611_v6 }
  0x5e   :  { %614 = vmatpush.bf16.msrb.mxu0 %v2610_v9 }
  0x62   :  { %615 = vmatpush.bf16.msrb.mxu0 %v2609_v17 }
  0x66   :  { %616 = vmatpush.bf16.msrb.mxu0 %v2608_v21 }
  0x6a   :  { %617 = vmatpush.bf16.msrb.mxu0 %v2607_v27 }
  0x6e   :  { %618 = vmatpush.bf16.msrb.mxu0 %v2606_v37 }
  0xa3   :  { %v208_v40 = vpop.xlane.xlu1 %207  ;;  %v204_v41 = vpop.xlane.xlu0 %203 }
  0xa4   :  { %v218_v45 = vmul.f32 %v3272_v34, %v204_v41  ;;  %v220_v55 = vmul.f32 %v3272_v34, %v208_v40 }
  0xa6   :  { %v222_v53 = vadd.f32 1e-06, %v218_v45  ;;  %v3276_v57 = vadd.f32 1e-06, %v220_v55 }
  0xa8   :  { %2724 = vrsqrt.f32 %v222_v53  ;;  %vm232_vm2 = vweird.f32 %v222_v53  ;;  %vm252_vm9 = vweird.f32 %v3276_v57 }
  0xa9   :  { %2726 = vrsqrt.f32 %v3276_v57 }
  0xab   :  { %v210_v58 = vpop.xlane.xlu1 %209  ;;  %v206_v59 = vpop.xlane.xlu0 %205 }
  0xac   :  { %v221_v61 = vmul.f32 %v3272_v34, %v210_v58  ;;  %v219_v62 = vmul.f32 %v3272_v34, %v206_v59 }
  0xae   :  { %v225_v63 = vadd.f32 1e-06, %v221_v61  ;;  %v223_v2 = vadd.f32 1e-06, %v219_v62  ;;  %v2725_v3 = vpop.eup %2724 }
  0xaf   :  { %v227_v7 = vmul.f32 %v2725_v3, %v222_v53  ;;  %v2727_v11 = vpop.eup %2726  ;;  %vm233_vm1 = vweird.f32 %v2725_v3 }
  0xb0   :  { %2728 = vrsqrt.f32 %v225_v63  ;;  %v247_v18 = vmul.f32 %v2727_v11, %v3276_v57  ;;  %vm234_vm3 = vmor %vm232_vm2, %vm233_vm1  ;;  %vm242_vm5 = vweird.f32 %v223_v2  ;;  %vm262_vm7 = vweird.f32 %v225_v63 }
  0xb1   :  { %2730 = vrsqrt.f32 %v223_v2  ;;  %v228_v8 = vmul.f32 %v2725_v3, %v227_v7  ;;  %vm253_vm10 = vweird.f32 %v2727_v11 }
  0xb2   :  { %v248_v24 = vmul.f32 %v2727_v11, %v247_v18  ;;  %vm254_vm12 = vmor %vm252_vm9, %vm253_vm10 }
  0xb3   :  { %v229_v10 = vmul.f32 0.5, %v228_v8 }
  0xb4   :  { %v249_v33 = vmul.f32 0.5, %v248_v24 }
  0xb5   :  { %v230_v13 = vsub.f32 1.5, %v229_v10 }
  0xb6   :  { %v2729_v12 = vpop.eup %2728  ;;  %v250_v41 = vsub.f32 1.5, %v249_v33 }
  0xb7   :  { %v2731_v14 = vpop.eup %2730  ;;  %v257_v15 = vmul.f32 %v2729_v12, %v225_v63  ;;  %v231_v19 = vmul.f32 %v2725_v3, %v230_v13  ;;  %vm263_vm8 = vweird.f32 %v2729_v12  ;;  %v631_v63 = vld [vmem:[#allocation14 + $0x8] sm:$0xff]  ;;  %v636_v13 = vld [vmem:[#allocation16 + $0x10] sm:$0xff] }
  0xb8   :  { %v237_v16 = vmul.f32 %v2731_v14, %v223_v2  ;;  %vm243_vm4 = vweird.f32 %v2731_v14  ;;  %vm264_vm11 = vmor %vm262_vm7, %vm263_vm8  ;;  %v635_v2 = vld [vmem:[#allocation16 + $0x8] sm:$0xff] }
  0xb9   :  { %v258_v22 = vmul.f32 %v2729_v12, %v257_v15  ;;  %v235_v25 = vsel %vm234_vm3, %v2725_v3, %v231_v19  ;;  %vm244_vm6 = vmor %vm242_vm5, %vm243_vm4 }
  0xba   :  { %v238_v20 = vmul.f32 %v2731_v14, %v237_v16  ;;  %v266_v31 = vmul.f32 %v235_v25, %v3251_v1  ;;  %v251_v1 = vmul.f32 %v2727_v11, %v250_v41 }
  0xbb   :  { %v259_v28 = vmul.f32 0.5, %v258_v22  ;;  %v633_v22 = vld [vmem:[#allocation14 + $0x18] sm:$0xff] }
  0xbc   :  { %v239_v23 = vmul.f32 0.5, %v238_v20  ;;  %v273_v39 = vmul.f32 %v2720_v30, %v266_v31  ;;  %v255_v44 = vsel %vm254_vm12, %v2727_v11, %v251_v1 }
  0xbd   :  { %v260_v38 = vsub.f32 1.5, %v259_v28  ;;  %v268_v46 = vmul.f32 %v255_v44, %v3249_v0 }
  0xbe   :  { %v240_v26 = vsub.f32 1.5, %v239_v23  ;;  %v637_v23 = vld [vmem:[#allocation16 + $0x18] sm:$0xff] }
  0xbf   :  { %v261_v43 = vmul.f32 %v2729_v12, %v260_v38  ;;  %v275_v32 = vmul.f32 %v2720_v30, %v268_v46 }
  0xc0   :  { %v241_v29 = vmul.f32 %v2731_v14, %v240_v26 }
  0xc2   :  { %v245_v35 = vsel %vm244_vm6, %v2731_v14, %v241_v29 }
  0xc3   :  { %v267_v36 = vmul.f32 %v245_v35, %v3259_v5  ;;  %v265_v5 = vsel %vm264_vm11, %v2729_v12, %v261_v43  ;;  %v632_v12 = vld [vmem:[#allocation14 + $0x10] sm:$0xff] }
  0xc4   :  { %v269_v45 = vmul.f32 %v265_v5, %v3257_v4 }
  0xc5   :  { %v274_v40 = vmul.f32 %v2720_v30, %v267_v36 }
  0xc6   :  { %v276_v47 = vmul.f32 %v2720_v30, %v269_v45 }
  0xc7   :  { %v277_v42 = vpack.c.bf16 %v274_v40, %v273_v39 }
  0xc8   :  { %v278_v48 = vpack.c.bf16 %v276_v47, %v275_v32 }
  0xc9   :  { %479 = vmatmul.bf16.vlgmr.msra.gmra.mxu0 %v277_v42  ;;  %498 = vmatmul.bf16.vlgmr.msra.gmra.mxu1 %v277_v42 }
  0xca   :  { %517 = vmatmul.bf16.vlgmr.msra.gmra.mxu2 %v277_v42  ;;  %536 = vmatmul.bf16.vlgmr.msra.gmra.mxu3 %v277_v42 }
  0xd9   :  { %484 = vmatmul.bf16.gmra.mxu0 %v278_v48  ;;  %503 = vmatmul.bf16.gmra.mxu1 %v278_v48 }
  0xda   :  { %522 = vmatmul.bf16.gmra.mxu2 %v278_v48  ;;  %541 = vmatmul.bf16.gmra.mxu3 %v278_v48 }
  0xe9   :  { %619 = vmatmul.bf16.vlgmr.msrb.gmra.mxu0 %v277_v42 }
  0xf9   :  { %624 = vmatmul.bf16.gmra.mxu0 %v278_v48 }
 0x146   :  { %v480_v51 = vpop.f32.mrf.mxu0  ;;  %v499_v52 = vpop.f32.mrf.mxu1 }
 0x147   :  { %v638_v53 = vmul.f32 %v630_v49, %v480_v51  ;;  %v642_v54 = vmul.f32 %v634_v50, %v499_v52 }
 0x149   :  { %v646_v55 = vadd.f32 %v642_v54, %v638_v53 }
 0x14b   :  { %v650_v56 = vmul.f32 0.17677669, %v646_v55 }
 0x14d   :  { %v3287_v4 = vpack.c.bf16 %v650_v56, %v650_v56  ;;  %v518_v0 = vpop.f32.mrf.mxu2  ;;  %v537_v57 = vpop.f32.mrf.mxu3 }
 0x14e   :  { %v658_v58 = vmul.f32 %v630_v49, %v518_v0  ;;  %v662_v59 = vmul.f32 %v634_v50, %v537_v57  ;;  %v482_v60 = vpop.f32.mrf.mxu0  ;;  %v501_v19 = vpop.f32.mrf.mxu1 }
 0x14f   :  { %690 = vrot.lane.b32.xlu1 %v3287_v4, %s3120_s27  ;;  %v639_v29 = vmul.f32 %v631_v63, %v482_v60  ;;  %v643_v30 = vmul.f32 %v635_v2, %v501_v19  ;;  %v766_v54 = vunpack.c.l.b16 %v3287_v4 }
 0x150   :  { %v666_v61 = vadd.f32 %v662_v59, %v658_v58 }
 0x151   :  { %v647_v36 = vadd.f32 %v643_v30, %v639_v29 }
 0x152   :  { %v3291_v62 = vpack.c.bf16 %v666_v61, %v666_v61 }
 0x153   :  { %v651_v41 = vmul.f32 0.17677669, %v647_v36 }
 0x154   :  { %710 = vrot.lane.b32.xlu2 %v3291_v62, %s3135_s10  ;;  %v772_v1 = vunpack.c.l.b16 %v3291_v62 }
 0x155   :  { %v520_v3 = vpop.f32.mrf.mxu2  ;;  %v539_v6 = vpop.f32.mrf.mxu3  ;;  %v655_v5 = vpack.c.bf16 %v651_v41, %v651_v41 }
 0x156   :  { %v659_v7 = vmul.f32 %v631_v63, %v520_v3  ;;  %v663_v8 = vmul.f32 %v635_v2, %v539_v6  ;;  %v485_v9 = vpop.f32.mrf.mxu0  ;;  %v504_v33 = vpop.f32.mrf.mxu1 }
 0x157   :  { %v640_v46 = vmul.f32 %v632_v12, %v485_v9  ;;  %v644_v47 = vmul.f32 %v636_v13, %v504_v33  ;;  %v767_v52 = vunpack.c.l.b16 %v655_v5 }
 0x158   :  { %v667_v10 = vadd.f32 %v663_v8, %v659_v7 }
 0x159   :  { %v648_v51 = vadd.f32 %v644_v47, %v640_v46  ;;  %v770_v57 = vpack.c.b16 %v767_v52, %v766_v54 }
 0x15a   :  { %v671_v11 = vpack.c.bf16 %v667_v10, %v667_v10 }
 0x15b   :  { %v652_v56 = vmul.f32 0.17677669, %v648_v51 }
 0x15c   :  { %718 = vrot.lane.b32.xlu2 %v3291_v62, %s3120_s27  ;;  %720 = vrot.lane.b32.xlu0 %v671_v11, %s3120_s27  ;;  %v773_v43 = vunpack.c.l.b16 %v671_v11 }
 0x15d   :  { %v523_v14 = vpop.f32.mrf.mxu2  ;;  %v542_v15 = vpop.f32.mrf.mxu3  ;;  %v656_v3 = vpack.c.bf16 %v652_v56, %v652_v56 }
 0x15e   :  { %v660_v16 = vmul.f32 %v632_v12, %v523_v14  ;;  %v664_v17 = vmul.f32 %v636_v13, %v542_v15  ;;  %v487_v18 = vpop.f32.mrf.mxu0  ;;  %v506_v44 = vpop.f32.mrf.mxu1  ;;  %v776_v45 = vpack.c.b16 %v773_v43, %v772_v1 }
 0x15f   :  { %v641_v48 = vmul.f32 %v633_v22, %v487_v18  ;;  %v645_v49 = vmul.f32 %v637_v23, %v506_v44 }
 0x160   :  { %v668_v20 = vadd.f32 %v664_v17, %v660_v16  ;;  %v786_v50 = vsel %vm778_vm13, %v776_v45, 0 }
 0x161   :  { %v649_v53 = vadd.f32 %v645_v49, %v641_v48 }
 0x162   :  { %v672_v21 = vpack.c.bf16 %v668_v20, %v668_v20 }
 0x163   :  { %v653_v58 = vmul.f32 0.17677669, %v649_v53 }
 0x164   :  { %712 = vrot.lane.b32.xlu2 %v671_v11, %s3135_s10  ;;  %722 = vrot.lane.b32.xlu0 %v672_v21, %s3120_s27  ;;  %v774_v37 = vunpack.c.l.b16 %v672_v21 }
 0x165   :  { %v525_v24 = vpop.f32.mrf.mxu2  ;;  %v544_v25 = vpop.f32.mrf.mxu3  ;;  %v657_v6 = vpack.c.bf16 %v653_v58, %v653_v58 }
 0x166   :  { %v661_v26 = vmul.f32 %v633_v22, %v525_v24  ;;  %v665_v27 = vmul.f32 %v637_v23, %v544_v25  ;;  %v620_v28 = vpop.f32.mrf.mxu0 }
 0x167   :  { %v3322_v61 = vpack.c.bf16 %v620_v28, %v620_v28  ;;  %v769_v10 = vunpack.c.l.b16 %v657_v6 }
 0x168   :  { %v669_v31 = vadd.f32 %v665_v27, %v661_v26 }
 0x169   :  { %v1109_v8 = vunpack.c.l.b16 %v3322_v61 }
 0x16a   :  { %v673_v35 = vpack.c.bf16 %v669_v31, %v669_v31 }
 0x16c   :  { %714 = vrot.lane.b32.xlu2 %v672_v21, %s3135_s10  ;;  %724 = vrot.lane.b32.xlu1 %v673_v35, %s3120_s27  ;;  %v775_v38 = vunpack.c.l.b16 %v673_v35 }
 0x16d   :  { %682 = vrot.lane.b32.xlu0 %v3287_v4, %s3135_s10 }
 0x16e   :  { %v622_v39 = vpop.f32.mrf.mxu0  ;;  %v777_v40 = vpack.c.b16 %v775_v38, %v774_v37 }
 0x16f   :  { %v3317_v59 = vpack.c.bf16 %v622_v39, %v622_v39 }
 0x170   :  { %v789_v42 = vsel %vm778_vm13, %v777_v40, 0 }
 0x171   :  { %797 = vmatpush.bf16.xpose.msrb.mxu1 %v789_v42 }
 0x174   :  { %716 = vrot.lane.b32.xlu2 %v673_v35, %s3135_s10  ;;  %732 = vrot.lane.b32.xlu1 %v673_v35, %s3136_s28 }
 0x175   :  { %692 = vrot.lane.b32.xlu0 %v655_v5, %s3120_s27 }
 0x176   :  { %v625_v32 = vpop.f32.mrf.mxu0 }
 0x177   :  { %v3313_v55 = vpack.c.bf16 %v625_v32, %v625_v32 }
 0x179   :  { %798 = vmatpush.bf16.xpose.msrb.mxu1 %v786_v50  ;;  %v1111_v63 = vunpack.c.l.b16 %v3313_v55 }
 0x17c   :  { %730 = vrot.lane.b32.xlu2 %v672_v21, %s3136_s28  ;;  %728 = vrot.lane.b32.xlu1 %v671_v11, %s3136_s28  ;;  %v768_v11 = vunpack.c.l.b16 %v656_v3 }
 0x17d   :  { %698 = vrot.lane.b32.xlu0 %v3287_v4, %s3136_s28  ;;  %v1110_v4 = vunpack.c.l.b16 %v3317_v59 }
 0x17e   :  { %v627_v0 = vpop.f32.mrf.mxu0  ;;  %v771_v12 = vpack.c.b16 %v769_v10, %v768_v11 }
 0x17f   :  { %v3319_v60 = vpack.c.bf16 %v627_v0, %v627_v0  ;;  %v1113_v9 = vpack.c.b16 %v1110_v4, %v1109_v8 }
 0x180   :  { %2326 = vmatmul.msk.bf16.vlgmr.msrb.gmra.mxu1 %vm778_vm13, %v770_v57 }
 0x181   :  { %v1112_v2 = vunpack.c.l.b16 %v3319_v60 }
 0x183   :  { %v1114_v7 = vpack.c.b16 %v1112_v2, %v1111_v63 }
 0x184   :  { %684 = vrot.lane.b32.xlu2 %v655_v5, %s3135_s10  ;;  %686 = vrot.lane.b32.xlu1 %v656_v3, %s3135_s10 }
 0x185   :  { %688 = vrot.lane.b32.xlu0 %v657_v6, %s3135_s10  ;;  %1129 = vmatpush.bf16.msra.mxu1 %v1114_v7 }
 0x189   :  { %1130 = vmatpush.bf16.msra.mxu1 %v1113_v9 }
 0x18c   :  { %726 = vrot.lane.b32.xlu2 %v3291_v62, %s3136_s28  ;;  %696 = vrot.lane.b32.xlu1 %v657_v6, %s3120_s27 }
 0x18d   :  { %702 = vrot.lane.b32.xlu0 %v656_v3, %s3136_s28 }
 0x190   :  { %2327 = vmatmul.msk.bf16.gmra.mxu1 %vm778_vm13, %v771_v12 }
 0x194   :  { %700 = vrot.lane.b32.xlu2 %v655_v5, %s3136_s28  ;;  %738 = vrot.lane.b32.xlu1 %v3322_v61, %s3135_s10 }
 0x195   :  { %742 = vrot.lane.b32.xlu0 %v3313_v55, %s3135_s10 }
 0x19c   :  { %694 = vrot.lane.b32.xlu2 %v656_v3, %s3120_s27  ;;  %746 = vrot.lane.b32.xlu1 %v3322_v61, %s3120_s27 }
 0x19d   :  { %752 = vrot.lane.b32.xlu0 %v3319_v60, %s3120_s27 }
 0x1a4   :  { %704 = vrot.lane.b32.xlu2 %v657_v6, %s3136_s28  ;;  %740 = vrot.lane.b32.xlu1 %v3317_v59, %s3135_s10 }
 0x1ac   :  { %748 = vrot.lane.b32.xlu1 %v3317_v59, %s3120_s27  ;;  %744 = vrot.lane.b32.xlu2 %v3319_v60, %s3135_s10 }
 0x1ae   :  { %v711_v62 = vpop.permute.xlu2 %710 }
 0x1af   :  { %v816_v23 = vunpack.c.l.b16 %v711_v62 }
 0x1b4   :  { %750 = vrot.lane.b32.xlu1 %v3313_v55, %s3120_s27 }
 0x1b6   :  { %v719_v13 = vpop.permute.xlu2 %718 }
 0x1b7   :  { %v859_v42 = vunpack.c.l.b16 %v719_v13 }
 0x1be   :  { %v713_v14 = vpop.permute.xlu2 %712 }
 0x1bf   :  { %v817_v21 = vunpack.c.l.b16 %v713_v14 }
 0x1c1   :  { %v691_v24 = vpop.permute.xlu1 %690  ;;  %v820_v27 = vpack.c.b16 %v817_v21, %v816_v23 }
 0x1c2   :  { %v853_v52 = vunpack.c.l.b16 %v691_v24 }
 0x1c3   :  { %v829_v28 = vsel %vm778_vm13, %v820_v27, 0 }
 0x1c6   :  { %v715_v15 = vpop.permute.xlu2 %714 }
 0x1c7   :  { %v818_v18 = vunpack.c.l.b16 %v715_v15 }
 0x1ce   :  { %v721_v16 = vpop.permute.xlu0 %720  ;;  %v717_v17 = vpop.permute.xlu2 %716 }
 0x1cf   :  { %v819_v19 = vunpack.c.l.b16 %v717_v17  ;;  %v860_v40 = vunpack.c.l.b16 %v721_v16 }
 0x1d1   :  { %v821_v20 = vpack.c.b16 %v819_v19, %v818_v18  ;;  %v863_v46 = vpack.c.b16 %v860_v40, %v859_v42 }
 0x1d3   :  { %v832_v22 = vsel %vm778_vm13, %v821_v20, 0  ;;  %v872_v32 = vsel %vm778_vm13, %v863_v46, 0 }
 0x1d4   :  { %840 = vmatpush.bf16.xpose.msrb.mxu2 %v832_v22 }
 0x1d6   :  { %v723_v25 = vpop.permute.xlu0 %722  ;;  %v731_v26 = vpop.permute.xlu2 %730 }
 0x1d7   :  { %v861_v31 = vunpack.c.l.b16 %v723_v25  ;;  %v904_v5 = vunpack.c.l.b16 %v731_v26 }
 0x1dc   :  { %841 = vmatpush.bf16.xpose.msrb.mxu2 %v829_v28 }
 0x1de   :  { %v725_v29 = vpop.permute.xlu1 %724  ;;  %v685_v30 = vpop.permute.xlu2 %684 }
 0x1df   :  { %v862_v33 = vunpack.c.l.b16 %v725_v29  ;;  %v683_v35 = vpop.permute.xlu0 %682  ;;  %v811_v36 = vunpack.c.l.b16 %v685_v30 }
 0x1e0   :  { %v810_v37 = vunpack.c.l.b16 %v683_v35 }
 0x1e1   :  { %v864_v38 = vpack.c.b16 %v862_v33, %v861_v31 }
 0x1e2   :  { %v814_v39 = vpack.c.b16 %v811_v36, %v810_v37 }
 0x1e3   :  { %v875_v41 = vsel %vm778_vm13, %v864_v38, 0 }
 0x1e4   :  { %2328 = vmatmul.msk.bf16.vlgmr.msrb.gmra.mxu2 %vm778_vm13, %v814_v39  ;;  %883 = vmatpush.bf16.xpose.msrb.mxu3 %v875_v41  ;;  %v3367_v41 = vld [vmem:[#allocation17] sm:$0xff] }
 0x1e6   :  { %v733_v43 = vpop.permute.xlu1 %732  ;;  %v727_v1 = vpop.permute.xlu2 %726 }
 0x1e7   :  { %v905_v44 = vunpack.c.l.b16 %v733_v43  ;;  %v693_v45 = vpop.permute.xlu0 %692  ;;  %v902_v53 = vunpack.c.l.b16 %v727_v1 }
 0x1e8   :  { %v854_v49 = vunpack.c.l.b16 %v693_v45 }
 0x1e9   :  { %v907_v47 = vpack.c.b16 %v905_v44, %v904_v5 }
 0x1ea   :  { %v857_v0 = vpack.c.b16 %v854_v49, %v853_v52 }
 0x1eb   :  { %v918_v48 = vsel %vm778_vm13, %v907_v47, 0  ;;  %v763_v47 = vld [vmem:[#allocation17 + $0x8] sm:$0xff] }
 0x1ec   :  { %884 = vmatpush.bf16.xpose.msrb.mxu3 %v872_v32  ;;  %926 = vmatpush.bf16.xpose.msra.mxu0 %v918_v48 }
 0x1ee   :  { %v729_v50 = vpop.permute.xlu1 %728  ;;  %v701_v51 = vpop.permute.xlu2 %700 }
 0x1ef   :  { %v903_v54 = vunpack.c.l.b16 %v729_v50  ;;  %v699_v56 = vpop.permute.xlu0 %698  ;;  %v897_v2 = vunpack.c.l.b16 %v701_v51 }
 0x1f0   :  { %v896_v63 = vunpack.c.l.b16 %v699_v56 }
 0x1f1   :  { %v906_v57 = vpack.c.b16 %v903_v54, %v902_v53 }
 0x1f2   :  { %v900_v9 = vpack.c.b16 %v897_v2, %v896_v63  ;;  %v764_v63 = vld [vmem:[#allocation17 + $0x10] sm:$0xff] }
 0x1f3   :  { %2330 = vmatmul.msk.bf16.vlgmr.msrb.gmra.mxu3 %vm778_vm13, %v857_v0  ;;  %v915_v58 = vsel %vm778_vm13, %v906_v57, 0 }
 0x1f4   :  { %927 = vmatpush.bf16.xpose.msra.mxu0 %v915_v58 }
 0x1f6   :  { %v695_v3 = vpop.permute.xlu2 %694  ;;  %v687_v6 = vpop.permute.xlu1 %686 }
 0x1f7   :  { %v812_v7 = vunpack.c.l.b16 %v687_v6  ;;  %v689_v4 = vpop.permute.xlu0 %688  ;;  %v855_v62 = vunpack.c.l.b16 %v695_v3 }
 0x1f8   :  { %v813_v8 = vunpack.c.l.b16 %v689_v4 }
 0x1fa   :  { %v815_v10 = vpack.c.b16 %v813_v8, %v812_v7 }
 0x1fb   :  { %2332 = vmatmul.msk.bf16.vlgmr.msra.gmra.mxu0 %vm778_vm13, %v900_v9  ;;  %v765_v9 = vld [vmem:[#allocation17 + $0x18] sm:$0xff] }
 0x1fc   :  { %2329 = vmatmul.msk.bf16.gmra.mxu2 %vm778_vm13, %v815_v10 }
 0x1fe   :  { %v705_v11 = vpop.permute.xlu2 %704  ;;  %v697_v12 = vpop.permute.xlu1 %696 }
 0x1ff   :  { %v856_v13 = vunpack.c.l.b16 %v697_v12  ;;  %v703_v14 = vpop.permute.xlu0 %702  ;;  %v899_v16 = vunpack.c.l.b16 %v705_v11 }
 0x200   :  { %v898_v17 = vunpack.c.l.b16 %v703_v14 }
 0x201   :  { %v858_v15 = vpack.c.b16 %v856_v13, %v855_v62  ;;  %v800_v62 = vpop.f32.mrf.mxu1 }
 0x202   :  { %v901_v23 = vpack.c.b16 %v899_v16, %v898_v17 }
 0x203   :  { %2331 = vmatmul.msk.bf16.gmra.mxu3 %vm778_vm13, %v858_v15 }
 0x206   :  { %v739_v18 = vpop.permute.xlu1 %738  ;;  %v745_v19 = vpop.permute.xlu2 %744 }
 0x207   :  { %v743_v20 = vpop.permute.xlu0 %742  ;;  %v1155_v21 = vunpack.c.l.b16 %v745_v19  ;;  %v1152_v27 = vunpack.c.l.b16 %v739_v18 }
 0x208   :  { %v1154_v22 = vunpack.c.l.b16 %v743_v20 }
 0x209   :  { %v802_v17 = vpop.f32.mrf.mxu1 }
 0x20a   :  { %v1157_v24 = vpack.c.b16 %v1155_v21, %v1154_v22  ;;  %v3428_v18 = vadd.f32 %v802_v17, %v763_v47 }
 0x20b   :  { %2333 = vmatmul.msk.bf16.gmra.mxu0 %vm778_vm13, %v901_v23  ;;  %v3437_v23 = vadd.f32 %v800_v62, %v3367_v41 }
 0x20c   :  { %1172 = vmatpush.bf16.msra.mxu2 %v1157_v24  ;;  %v942_v20 = vsel %vm778_vm13, %v3428_v18, -inf }
 0x20e   :  { %v747_v25 = vpop.permute.xlu1 %746 }
 0x20f   :  { %v753_v31 = vpop.permute.xlu0 %752  ;;  %v1195_v39 = vunpack.c.l.b16 %v747_v25 }
 0x210   :  { %v1198_v35 = vunpack.c.l.b16 %v753_v31 }
 0x211   :  { %v805_v19 = vpop.f32.mrf.mxu1 }
 0x212   :  { %v3432_v21 = vadd.f32 %v805_v19, %v764_v63 }
 0x214   :  { %v945_v22 = vsel %vm778_vm13, %v3432_v21, -inf }
 0x216   :  { %v741_v26 = vpop.permute.xlu1 %740 }
 0x217   :  { %v1153_v28 = vunpack.c.l.b16 %v741_v26 }
 0x219   :  { %v1156_v29 = vpack.c.b16 %v1153_v28, %v1152_v27  ;;  %v807_v24 = vpop.f32.mrf.mxu1 }
 0x21a   :  { %v3440_v27 = vadd.f32 %v807_v24, %v765_v9 }
 0x21b   :  { %1173 = vmatpush.bf16.msra.mxu2 %v1156_v29  ;;  %v939_v29 = vsel %vm778_vm13, %v3437_v23, -inf }
 0x21e   :  { %v749_v30 = vpop.permute.xlu1 %748 }
 0x21f   :  { %v1196_v37 = vunpack.c.l.b16 %v749_v30  ;;  %v948_v30 = vsel %vm778_vm13, %v3440_v27, -inf }
 0x221   :  { %v1199_v40 = vpack.c.b16 %v1196_v37, %v1195_v39 }
 0x226   :  { %v751_v33 = vpop.permute.xlu1 %750 }
 0x227   :  { %v1197_v36 = vunpack.c.l.b16 %v751_v33 }
 0x229   :  { %v1200_v38 = vpack.c.b16 %v1198_v35, %v1197_v36 }
 0x22b   :  { %1215 = vmatpush.bf16.msra.mxu3 %v1200_v38 }
 0x22f   :  { %1216 = vmatpush.bf16.msra.mxu3 %v1199_v40 }
 0x267   :  { %v843_v42 = vpop.f32.mrf.mxu2 }
 0x268   :  { %v3370_v43 = vadd.f32 %v843_v42, %v3367_v41 }
 0x26a   :  { %v951_v1 = vsel %vm778_vm13, %v3370_v43, -inf }
 0x26b   :  { %952 = vmax.xlane.f32.xlu1 %v951_v1 }
 0x26f   :  { %v845_v56 = vpop.f32.mrf.mxu2 }
 0x270   :  { %v3392_v0 = vadd.f32 %v845_v56, %v763_v47 }
 0x272   :  { %v954_v57 = vsel %vm778_vm13, %v3392_v0, -inf }
 0x276   :  { %v886_v5 = vpop.f32.mrf.mxu3 }
 0x277   :  { %v3380_v48 = vadd.f32 %v886_v5, %v3367_v41 }
 0x278   :  { %v929_v44 = vpop.f32.mrf.mxu0 }
 0x279   :  { %v3375_v45 = vadd.f32 %v929_v44, %v3367_v41  ;;  %v963_v54 = vsel %vm778_vm13, %v3380_v48, -inf }
 0x27b   :  { %v975_v46 = vsel %vm778_vm13, %v3375_v45, -inf }
 0x27c   :  { %976 = vmax.xlane.f32.xlu2 %v975_v46 }
 0x27e   :  { %v888_v32 = vpop.f32.mrf.mxu3 }
 0x27f   :  { %v3382_v49 = vadd.f32 %v888_v32, %v763_v47  ;;  %v848_v58 = vpop.f32.mrf.mxu2 }
 0x280   :  { %v931_v50 = vpop.f32.mrf.mxu0  ;;  %v3396_v2 = vadd.f32 %v848_v58, %v764_v63 }
 0x281   :  { %v3384_v51 = vadd.f32 %v931_v50, %v763_v47  ;;  %v966_v52 = vsel %vm778_vm13, %v3382_v49, -inf }
 0x282   :  { %967 = vmax.xlane.f32.xlu1 %v966_v52  ;;  %v957_v6 = vsel %vm778_vm13, %v3396_v2, -inf }
 0x283   :  { %v978_v53 = vsel %vm778_vm13, %v3384_v51, -inf }
 0x284   :  { %979 = vmax.xlane.f32.xlu0 %v978_v53  ;;  %964 = vmax.xlane.f32.xlu2 %v963_v54 }
 0x286   :  { %v891_v3 = vpop.f32.mrf.mxu3 }
 0x287   :  { %v3400_v7 = vadd.f32 %v891_v3, %v764_v63  ;;  %v850_v12 = vpop.f32.mrf.mxu2 }
 0x288   :  { %v3416_v13 = vadd.f32 %v850_v12, %v765_v9 }
 0x289   :  { %v969_v4 = vsel %vm778_vm13, %v3400_v7, -inf }
 0x28c   :  { %955 = vmax.xlane.f32.xlu0 %v954_v57 }
 0x28e   :  { %v893_v8 = vpop.f32.mrf.mxu3 }
 0x28f   :  { %v3408_v10 = vadd.f32 %v893_v8, %v765_v9 }
 0x291   :  { %v972_v11 = vsel %vm778_vm13, %v3408_v10, -inf }
 0x294   :  { %958 = vmax.xlane.f32.xlu0 %v957_v6 }
 0x29b   :  { %758 = vrot.lane.b32.xlu1 %v3313_v55, %s3136_s28  ;;  %v934_v55 = vpop.f32.mrf.mxu0 }
 0x29c   :  { %970 = vmax.xlane.f32.xlu0 %v969_v4  ;;  %760 = vrot.lane.b32.xlu2 %v3319_v60, %s3136_s28  ;;  %v960_v60 = vsel %vm778_vm13, %v3416_v13, -inf  ;;  %v3420_v15 = vadd.f32 %v934_v55, %v764_v63 }
 0x2a3   :  { %v936_v14 = vpop.f32.mrf.mxu0 }
 0x2a4   :  { %973 = vmax.xlane.f32.xlu0 %v972_v11  ;;  %754 = vrot.lane.b32.xlu2 %v3322_v61, %s3136_s28  ;;  %v3422_v16 = vadd.f32 %v936_v14, %v765_v9 }
 0x2a6   :  { %v984_v61 = vsel %vm778_vm13, %v3422_v16, -inf }
 0x2b8   :  { %756 = vrot.lane.b32.xlu0 %v3317_v59, %s3136_s28  ;;  %v981_v59 = vsel %vm778_vm13, %v3420_v15, -inf }
 0x2c5   :  { %961 = vmax.xlane.f32.xlu1 %v960_v60 }
 0x2cd   :  { %985 = vmax.xlane.f32.xlu1 %v984_v61  ;;  %982 = vmax.xlane.f32.xlu2 %v981_v59 }
 0x2d5   :  { %943 = vmax.xlane.f32.xlu1 %v942_v20 }
 0x2dd   :  { %946 = vmax.xlane.f32.xlu1 %v945_v22 }
 0x2de   :  { %v953_v25 = vpop.xlane.xlu1 %952 }
 0x2df   :  { %v991_v26 = vsub.f32 %v3370_v43, %v953_v25 }
 0x2e1   :  { %v1011_v28 = vmul.f32 1.442695, %v991_v26 }
 0x2e2   :  { %940 = vmax.xlane.f32.xlu0 %v939_v29 }
 0x2e3   :  { %2732 = vpow2.f32 %v1011_v28 }
 0x2e5   :  { %949 = vmax.xlane.f32.xlu1 %v948_v30 }
 0x2e9   :  { %v2733_v31 = vpop.eup %2732 }
 0x2ea   :  { %v1047_v33 = vsel %vm778_vm13, %v2733_v31, 0.0  ;;  %v1087_v57 = vpack.c.bf16 %v2733_v31, %v2733_v31 }
 0x2eb   :  { %1048 = vadd.xlane.f32.xlu2 %v1047_v33 }
 0x2ec   :  { %v1146_v6 = vunpack.c.l.b16 %v1087_v57 }
 0x2ef   :  { %v977_v35 = vpop.xlane.xlu2 %976 }
 0x2f0   :  { %v999_v59 = vsub.f32 %v3375_v45, %v977_v35 }
 0x2f2   :  { %v1027_v24 = vmul.f32 1.442695, %v999_v59 }
 0x2f5   :  { %v968_v36 = vpop.xlane.xlu1 %967 }
 0x2f6   :  { %v996_v37 = vsub.f32 %v3382_v49, %v968_v36 }
 0x2f7   :  { %v980_v38 = vpop.xlane.xlu0 %979  ;;  %v965_v39 = vpop.xlane.xlu2 %964 }
 0x2f8   :  { %v1021_v40 = vmul.f32 1.442695, %v996_v37  ;;  %v995_v41 = vsub.f32 %v3380_v48, %v965_v39  ;;  %v1000_v43 = vsub.f32 %v3384_v51, %v980_v38 }
 0x2fa   :  { %2734 = vpow2.f32 %v1021_v40  ;;  %v1019_v42 = vmul.f32 1.442695, %v995_v41  ;;  %v1029_v1 = vmul.f32 1.442695, %v1000_v43 }
 0x2fc   :  { %2736 = vpow2.f32 %v1019_v42 }
 0x2fd   :  { %2738 = vpow2.f32 %v1029_v1 }
 0x2ff   :  { %v956_v5 = vpop.xlane.xlu0 %955  ;;  %v761_v63 = vpop.permute.xlu2 %760 }
 0x300   :  { %v3450_v44 = vpop.eup %2734  ;;  %v992_v46 = vsub.f32 %v3392_v0, %v956_v5  ;;  %v1241_v9 = vunpack.c.l.b16 %v761_v63 }
 0x301   :  { %v1092_v47 = vpack.c.bf16 %v3450_v44, %v3450_v44 }
 0x302   :  { %v1013_v32 = vmul.f32 1.442695, %v992_v46  ;;  %v2737_v49 = vpop.eup %2736 }
 0x303   :  { %v1091_v50 = vpack.c.bf16 %v2737_v49, %v2737_v49  ;;  %v1059_v48 = vsel %vm778_vm13, %v2737_v49, 0.0  ;;  %v1190_v52 = vunpack.c.l.b16 %v1092_v47  ;;  %v2739_v56 = vpop.eup %2738 }
 0x304   :  { %2740 = vpow2.f32 %v1013_v32  ;;  %1060 = vadd.xlane.f32.xlu2 %v1059_v48  ;;  %v1074_v3 = vsel %vm778_vm13, %v2739_v56, 0.0  ;;  %v1096_v31 = vpack.c.bf16 %v2739_v56, %v2739_v56 }
 0x305   :  { %v1189_v51 = vunpack.c.l.b16 %v1091_v50 }
 0x306   :  { %v1233_v38 = vunpack.c.l.b16 %v1096_v31 }
 0x307   :  { %v959_v53 = vpop.xlane.xlu0 %958  ;;  %v1193_v54 = vpack.c.b16 %v1190_v52, %v1189_v51  ;;  %v755_v45 = vpop.permute.xlu2 %754 }
 0x308   :  { %v1238_v36 = vunpack.c.l.b16 %v755_v45  ;;  %v993_v42 = vsub.f32 %v3396_v2, %v959_v53 }
 0x309   :  { %2338 = vmatmul.msk.bf16.vlgmr.msra.gmra.mxu3 %vm778_vm13, %v1193_v54 }
 0x30a   :  { %v3456_v58 = vpop.eup %2740  ;;  %v1015_v43 = vmul.f32 1.442695, %v993_v42 }
 0x30b   :  { %v1088_v0 = vpack.c.bf16 %v3456_v58, %v3456_v58 }
 0x30c   :  { %1075 = vadd.xlane.f32.xlu2 %v1074_v3 }
 0x30d   :  { %v1147_v4 = vunpack.c.l.b16 %v1088_v0  ;;  %v759_v8 = vpop.permute.xlu1 %758 }
 0x30e   :  { %v1240_v11 = vunpack.c.l.b16 %v759_v8 }
 0x30f   :  { %v1150_v55 = vpack.c.b16 %v1147_v4, %v1146_v6  ;;  %v971_v12 = vpop.xlane.xlu0 %970 }
 0x310   :  { %v1243_v62 = vpack.c.b16 %v1241_v9, %v1240_v11  ;;  %v997_v60 = vsub.f32 %v3400_v7, %v971_v12 }
 0x311   :  { %2336 = vmatmul.msk.bf16.vlgmr.msra.gmra.mxu2 %vm778_vm13, %v1150_v55 }
 0x312   :  { %v1023_v14 = vmul.f32 1.442695, %v997_v60  ;;  %1258 = vmatpush.bf16.msrb.mxu0 %v1243_v62 }
 0x314   :  { %2742 = vpow2.f32 %v1023_v14 }
 0x317   :  { %v974_v17 = vpop.xlane.xlu0 %973 }
 0x318   :  { %v998_v61 = vsub.f32 %v3408_v10, %v974_v17 }
 0x31a   :  { %v2743_v19 = vpop.eup %2742  ;;  %v1025_v20 = vmul.f32 1.442695, %v998_v61 }
 0x31b   :  { %v1065_v22 = vsel %vm778_vm13, %v2743_v19, 0.0  ;;  %v1093_v25 = vpack.c.bf16 %v2743_v19, %v2743_v19 }
 0x31c   :  { %2744 = vpow2.f32 %v1025_v20  ;;  %1066 = vadd.xlane.f32.xlu2 %v1065_v22 }
 0x31d   :  { %2746 = vpow2.f32 %v1027_v24  ;;  %v1191_v28 = vunpack.c.l.b16 %v1093_v25 }
 0x31e   :  { %2748 = vpow2.f32 %v1015_v43 }
 0x322   :  { %v3467_v7 = vpop.eup %2744 }
 0x323   :  { %v1094_v26 = vpack.c.bf16 %v3467_v7, %v3467_v7  ;;  %v2747_v30 = vpop.eup %2746 }
 0x324   :  { %v1095_v33 = vpack.c.bf16 %v2747_v30, %v2747_v30  ;;  %v3475_v47 = vpop.eup %2748  ;;  %v1071_v19 = vsel %vm778_vm13, %v2747_v30, 0.0 }
 0x325   :  { %v1192_v29 = vunpack.c.l.b16 %v1094_v26  ;;  %v1089_v2 = vpack.c.bf16 %v3475_v47, %v3475_v47 }
 0x326   :  { %v1232_v40 = vunpack.c.l.b16 %v1095_v33 }
 0x327   :  { %v1194_v10 = vpack.c.b16 %v1192_v29, %v1191_v28 }
 0x328   :  { %v1236_v41 = vpack.c.b16 %v1233_v38, %v1232_v40  ;;  %v1053_v40 = vsel %vm778_vm13, %v3475_v47, 0.0 }
 0x329   :  { %2339 = vmatmul.msk.bf16.gmra.mxu3 %vm778_vm13, %v1194_v10 }
 0x32a   :  { %v757_v35 = vpop.permute.xlu0 %756 }
 0x32b   :  { %v1239_v37 = vunpack.c.l.b16 %v757_v35 }
 0x32d   :  { %v1242_v39 = vpack.c.b16 %v1239_v37, %v1238_v36  ;;  %v1062_v37 = vsel %vm778_vm13, %v3450_v44, 0.0 }
 0x32f   :  { %1259 = vmatpush.bf16.msrb.mxu0 %v1242_v39 }
 0x332   :  { %2340 = vmatmul.msk.bf16.vlgmr.msrb.gmra.mxu0 %vm778_vm13, %v1236_v41  ;;  %v1068_v41 = vsel %vm778_vm13, %v3467_v7, 0.0 }
 0x338   :  { %v962_v1 = vpop.xlane.xlu1 %961 }
 0x339   :  { %v994_v5 = vsub.f32 %v3416_v13, %v962_v1  ;;  %v1148_v13 = vunpack.c.l.b16 %v1089_v2 }
 0x33b   :  { %v1017_v46 = vmul.f32 1.442695, %v994_v5 }
 0x33d   :  { %2750 = vpow2.f32 %v1017_v46 }
 0x340   :  { %v986_v32 = vpop.xlane.xlu1 %985  ;;  %v983_v49 = vpop.xlane.xlu2 %982 }
 0x341   :  { %v1002_v50 = vsub.f32 %v3422_v16, %v986_v32  ;;  %v1001_v48 = vsub.f32 %v3420_v15, %v983_v49 }
 0x343   :  { %v2751_v52 = vpop.eup %2750  ;;  %v1033_v51 = vmul.f32 1.442695, %v1002_v50  ;;  %v1031_v53 = vmul.f32 1.442695, %v1001_v48 }
 0x344   :  { %v1090_v54 = vpack.c.bf16 %v2751_v52, %v2751_v52  ;;  %v1056_v33 = vsel %vm778_vm13, %v2751_v52, 0.0 }
 0x345   :  { %2752 = vpow2.f32 %v1033_v51 }
 0x346   :  { %2754 = vpow2.f32 %v1031_v53  ;;  %v1149_v56 = vunpack.c.l.b16 %v1090_v54 }
 0x348   :  { %v944_v57 = vpop.xlane.xlu1 %943  ;;  %v1151_v0 = vpack.c.b16 %v1149_v56, %v1148_v13 }
 0x349   :  { %v988_v63 = vsub.f32 %v3428_v18, %v944_v57 }
 0x34a   :  { %2337 = vmatmul.msk.bf16.gmra.mxu2 %vm778_vm13, %v1151_v0 }
 0x34b   :  { %v2753_v16 = vpop.eup %2752  ;;  %v1005_v3 = vmul.f32 1.442695, %v988_v63 }
 0x34c   :  { %v2755_v15 = vpop.eup %2754  ;;  %v1080_v6 = vsel %vm778_vm13, %v2753_v16, 0.0  ;;  %v1098_v4 = vpack.c.bf16 %v2753_v16, %v2753_v16 }
 0x34d   :  { %2756 = vpow2.f32 %v1005_v3  ;;  %1081 = vadd.xlane.f32.xlu2 %v1080_v6  ;;  %v1097_v8 = vpack.c.bf16 %v2755_v15, %v2755_v15  ;;  %v1077_v31 = vsel %vm778_vm13, %v2755_v15, 0.0 }
 0x34e   :  { %v1235_v9 = vunpack.c.l.b16 %v1098_v4 }
 0x34f   :  { %v1234_v11 = vunpack.c.l.b16 %v1097_v8 }
 0x350   :  { %v947_v55 = vpop.xlane.xlu1 %946 }
 0x351   :  { %v1237_v12 = vpack.c.b16 %v1235_v9, %v1234_v11  ;;  %v989_v20 = vsub.f32 %v3432_v21, %v947_v55  ;;  %v1050_v21 = vsel %vm778_vm13, %v3456_v58, 0.0 }
 0x353   :  { %v2757_v62 = vpop.eup %2756  ;;  %2341 = vmatmul.msk.bf16.gmra.mxu0 %vm778_vm13, %v1237_v12  ;;  %v1007_v29 = vmul.f32 1.442695, %v989_v20 }
 0x354   :  { %v1038_v18 = vsel %vm778_vm13, %v2757_v62, 0.0  ;;  %v1084_v22 = vpack.c.bf16 %v2757_v62, %v2757_v62 }
 0x355   :  { %1039 = vadd.xlane.f32.xlu0 %v1038_v18  ;;  %v941_v60 = vpop.xlane.xlu0 %940 }
 0x356   :  { %v987_v14 = vsub.f32 %v3437_v23, %v941_v60  ;;  %v1104_v10 = vunpack.c.l.b16 %v1084_v22 }
 0x358   :  { %v1003_v17 = vmul.f32 1.442695, %v987_v14  ;;  %v950_v61 = vpop.xlane.xlu1 %949 }
 0x359   :  { %v990_v59 = vsub.f32 %v3440_v27, %v950_v61 }
 0x35a   :  { %2758 = vpow2.f32 %v1003_v17 }
 0x35b   :  { %v1009_v25 = vmul.f32 1.442695, %v990_v59 }
 0x35d   :  { %1072 = vadd.xlane.f32.xlu0 %v1071_v19  ;;  %2760 = vpow2.f32 %v1009_v25 }
 0x35e   :  { %2762 = vpow2.f32 %v1007_v29  ;;  %v1049_v42 = vpop.xlane.xlu2 %1048 }
 0x360   :  { %v2759_v24 = vpop.eup %2758 }
 0x361   :  { %v1083_v26 = vpack.c.bf16 %v2759_v24, %v2759_v24  ;;  %v1035_v28 = vsel %vm778_vm13, %v2759_v24, 0.0 }
 0x362   :  { %1036 = vadd.xlane.f32.xlu1 %v1035_v28 }
 0x363   :  { %v1103_v23 = vunpack.c.l.b16 %v1083_v26  ;;  %v3495_v27 = vpop.eup %2760 }
 0x364   :  { %v3497_v30 = vpop.eup %2762  ;;  %v1086_v35 = vpack.c.bf16 %v3495_v27, %v3495_v27 }
 0x365   :  { %v1107_v45 = vpack.c.b16 %v1104_v10, %v1103_v23  ;;  %1078 = vadd.xlane.f32.xlu0 %v1077_v31  ;;  %v1085_v36 = vpack.c.bf16 %v3497_v30, %v3497_v30 }
 0x366   :  { %v1106_v38 = vunpack.c.l.b16 %v1086_v35 }
 0x367   :  { %2334 = vmatmul.msk.bf16.vlgmr.msra.gmra.mxu1 %vm778_vm13, %v1107_v45  ;;  %v1105_v58 = vunpack.c.l.b16 %v1085_v36 }
 0x369   :  { %v1108_v39 = vpack.c.b16 %v1106_v38, %v1105_v58  ;;  %v1041_v58 = vsel %vm778_vm13, %v3497_v30, 0.0 }
 0x36a   :  { %1051 = vadd.xlane.f32.xlu1 %v1050_v21 }
 0x36d   :  { %1057 = vadd.xlane.f32.xlu0 %v1056_v33 }
 0x372   :  { %1063 = vadd.xlane.f32.xlu1 %v1062_v37  ;;  %v1044_v37 = vsel %vm778_vm13, %v3495_v27, 0.0  ;;  %v2615_v27 = vld [vmem:[#allocation10 + $0x8] sm:$0xff] }
 0x377   :  { %2335 = vmatmul.msk.bf16.gmra.mxu1 %vm778_vm13, %v1108_v39  ;;  %v1061_v43 = vpop.xlane.xlu2 %1060  ;;  %v2621_v39 = vld [vmem:[#allocation10 + $0x38] sm:$0xff] }
 0x378   :  { %1431 = vmatpush.bf16.msrb.mxu1 %v2621_v39  ;;  %v2838_v39 = vld [vmem:[#allocation2 + $0x10] sm:$0xff] }
 0x37a   :  { %1054 = vadd.xlane.f32.xlu1 %v1053_v40  ;;  %v2620_v40 = vld [vmem:[#allocation10 + $0x30] sm:$0xff] }
 0x37c   :  { %1432 = vmatpush.bf16.msrb.mxu1 %v2620_v40 }
 0x37f   :  { %v1076_v44 = vpop.xlane.xlu2 %1075 }
 0x380   :  { %2764 = vrcp.f32 %v1076_v44  ;;  %v2614_v44 = vld [vmem:[#allocation10] sm:$0xff] }
 0x382   :  { %1069 = vadd.xlane.f32.xlu1 %v1068_v41  ;;  %v2619_v41 = vld [vmem:[#allocation10 + $0x28] sm:$0xff] }
 0x383   :  { %1433 = vmatpush.bf16.msrb.mxu1 %v2619_v41 }
 0x386   :  { %v2765_v50 = vpop.eup %2764 }
 0x38c   :  { %v1218_v54 = vpop.f32.mrf.mxu3 }
 0x38f   :  { %v1067_v60 = vpop.xlane.xlu2 %1066 }
 0x394   :  { %v1175_v47 = vpop.f32.mrf.mxu2  ;;  %v1220_v6 = vpop.f32.mrf.mxu3 }
 0x39c   :  { %v1177_v13 = vpop.f32.mrf.mxu2 }
 0x3ac   :  { %v1223_v14 = vpop.f32.mrf.mxu3 }
 0x3af   :  { %v1261_v5 = vpop.f32.mrf.mxu0 }
 0x3b4   :  { %v1225_v29 = vpop.f32.mrf.mxu3 }
 0x3b7   :  { %v1263_v32 = vpop.f32.mrf.mxu0 }
 0x3b8   :  { %v1300_v2 = vmul.f32 %v2765_v50, %v1263_v32 }
 0x3c0   :  { %v1082_v26 = vpop.xlane.xlu2 %1081 }
 0x3c8   :  { %v3511_v1 = vpop.xlane.xlu0 %1039 }
 0x3cd   :  { %v1180_v4 = vpop.f32.mrf.mxu2 }
 0x3d0   :  { %v1073_v46 = vpop.xlane.xlu0 %1072  ;;  %v1266_v24 = vpop.f32.mrf.mxu0 }
 0x3d1   :  { %2766 = vrcp.f32 %v1073_v46 }
 0x3d2   :  { %2768 = vrcp.f32 %v1049_v42  ;;  %v2618_v42 = vld [vmem:[#allocation10 + $0x20] sm:$0xff] }
 0x3d3   :  { %1434 = vmatpush.bf16.msrb.mxu1 %v2618_v42 }
 0x3d5   :  { %v3513_v49 = vpop.xlane.xlu1 %1036  ;;  %v1182_v61 = vpop.f32.mrf.mxu2 }
 0x3d7   :  { %v2767_v48 = vpop.eup %2766 }
 0x3d8   :  { %v1299_v52 = vmul.f32 %v2767_v48, %v1261_v5  ;;  %v1079_v53 = vpop.xlane.xlu0 %1078  ;;  %v2769_v56 = vpop.eup %2768  ;;  %v2616_v5 = vld [vmem:[#allocation10 + $0x10] sm:$0xff] }
 0x3d9   :  { %v1291_v0 = vmul.f32 %v2769_v56, %v1175_v47  ;;  %v1268_v21 = vpop.f32.mrf.mxu0 }
 0x3da   :  { %v2690_v51 = vpack.i.bf16 %v1300_v2, %v1299_v52 }
 0x3dc   :  { %2691 = vrot.lane.b32.xlu0 %v2690_v51, %s3135_s10 }
 0x3dd   :  { %v1052_v7 = vpop.xlane.xlu1 %1051 }
 0x3de   :  { %2770 = vrcp.f32 %v1052_v7 }
 0x3df   :  { %2772 = vrcp.f32 %v1061_v43  ;;  %v2617_v43 = vld [vmem:[#allocation10 + $0x18] sm:$0xff] }
 0x3e0   :  { %v1058_v15 = vpop.xlane.xlu0 %1057  ;;  %1435 = vmatpush.bf16.msrb.mxu1 %v2617_v43  ;;  %v2839_v43 = vld [vmem:[#allocation2 + $0x18] sm:$0xff] }
 0x3e4   :  { %v2771_v57 = vpop.eup %2770  ;;  %1436 = vmatpush.bf16.msrb.mxu1 %v2616_v5  ;;  %v1132_v46 = vpop.f32.mrf.mxu1 }
 0x3e5   :  { %v1064_v63 = vpop.xlane.xlu1 %1063  ;;  %v1292_v16 = vmul.f32 %v2771_v57, %v1177_v13  ;;  %v2773_v8 = vpop.eup %2772 }
 0x3e6   :  { %2774 = vrcp.f32 %v1064_v63  ;;  %v1295_v11 = vmul.f32 %v2773_v8, %v1218_v54 }
 0x3e7   :  { %v2695_v3 = vpack.i.bf16 %v1292_v16, %v1291_v0  ;;  %2776 = vrcp.f32 %v1058_v15 }
 0x3e8   :  { %1437 = vmatpush.bf16.msrb.mxu1 %v2615_v27 }
 0x3e9   :  { %2696 = vrot.lane.b32.xlu2 %v2695_v3, %s3136_s28 }
 0x3ec   :  { %v2775_v9 = vpop.eup %2774  ;;  %1438 = vmatpush.bf16.msrb.mxu1 %v2614_v44  ;;  %v1134_v32 = vpop.f32.mrf.mxu1  ;;  %v2488_v44 = vld [vmem:[#allocation11 + $0xe0] sm:$0xf] }
 0x3ed   :  { %v1055_v55 = vpop.xlane.xlu1 %1054  ;;  %v1296_v12 = vmul.f32 %v2775_v9, %v1220_v6  ;;  %v2777_v18 = vpop.eup %2776 }
 0x3ee   :  { %2778 = vrcp.f32 %v1055_v55  ;;  %v1294_v20 = vmul.f32 %v2777_v18, %v1182_v61 }
 0x3ef   :  { %v2700_v62 = vpack.i.bf16 %v1296_v12, %v1295_v11  ;;  %2780 = vrcp.f32 %v1067_v60 }
 0x3f1   :  { %2701 = vrot.lane.b32.xlu1 %v2700_v62, %s3120_s27 }
 0x3f4   :  { %v2779_v17 = vpop.eup %2778  ;;  %v1137_v8 = vpop.f32.mrf.mxu1 }
 0x3f5   :  { %v1070_v59 = vpop.xlane.xlu1 %1069  ;;  %v1293_v19 = vmul.f32 %v2779_v17, %v1180_v4  ;;  %v2781_v25 = vpop.eup %2780 }
 0x3f6   :  { %2782 = vrcp.f32 %v1070_v59  ;;  %v1297_v10 = vmul.f32 %v2781_v25, %v1223_v14 }
 0x3f7   :  { %v2705_v22 = vpack.i.bf16 %v1294_v20, %v1293_v19  ;;  %2784 = vrcp.f32 %v1079_v53 }
 0x3f8   :  { %2786 = vrcp.f32 %v1082_v26 }
 0x3f9   :  { %2706 = vrot.lane.b32.xlu1 %v2705_v22, %s3136_s28  ;;  %2788 = vrcp.f32 %v3511_v1 }
 0x3fa   :  { %2790 = vrcp.f32 %v3513_v49 }
 0x3fc   :  { %v2783_v28 = vpop.eup %2782  ;;  %v1139_v12 = vpop.f32.mrf.mxu1 }
 0x3fd   :  { %v1298_v23 = vmul.f32 %v2783_v28, %v1225_v29  ;;  %v2785_v45 = vpop.eup %2784 }
 0x3fe   :  { %v1301_v33 = vmul.f32 %v2785_v45, %v1266_v24  ;;  %v2787_v35 = vpop.eup %2786  ;;  %v2836_v45 = vld [vmem:[#allocation2] sm:$0xff] }
 0x3ff   :  { %v2710_v31 = vpack.i.bf16 %v1298_v23, %v1297_v10  ;;  %v1302_v36 = vmul.f32 %v2787_v35, %v1268_v21  ;;  %v2789_v50 = vpop.eup %2788 }
 0x400   :  { %v2791_v2 = vpop.eup %2790  ;;  %v1288_v7 = vmul.f32 %v2789_v50, %v1134_v32  ;;  %v2490_v50 = vld [vmem:[#allocation11 + $0xf0] sm:$0xf0] }
 0x401   :  { %2711 = vrot.lane.b32.xlu1 %v2710_v31, %s3120_s27  ;;  %v2715_v38 = vpack.i.bf16 %v1302_v36, %v1301_v33  ;;  %v1287_v51 = vmul.f32 %v2791_v2, %v1132_v46  ;;  %v2837_v36 = vld [vmem:[#allocation2 + $0x8] sm:$0xff]  ;;  %v2652_v46 = vld [vmem:[#allocation11 + $0xec] sm:$0xf0] }
 0x402   :  { %v2489_v32 = vor.u32 %v2652_v46, %v2488_v44  ;;  %v2408_v46 = vld [vmem:[#allocation11 + $0x40] sm:$0xf] }
 0x404   :  { %1720 = vmatpush.bf16.msrb.mxu2 %v2489_v32  ;;  %v2630_v32 = vld [vmem:[#allocation11 + $0x44] sm:$0xf] }
 0x406   :  { %1045 = vadd.xlane.f32.xlu0 %v1044_v37 }
 0x409   :  { %2716 = vrot.lane.b32.xlu1 %v2715_v38, %s3135_s10 }
 0x412   :  { %1042 = vadd.xlane.f32.xlu2 %v1041_v58 }
 0x443   :  { %v2697_v30 = vpop.permute.xlu2 %2696 }
 0x444   :  { %v2699_v48 = vunpack.i.h.bf16 %v2697_v30  ;;  %v2698_v47 = vunpack.i.l.bf16 %v2697_v30  ;;  %v2650_v30 = vld [vmem:[#allocation11 + $0xe4] sm:$0xf] }
 0x445   :  { %v2493_v2 = vor.u32 %v2650_v30, %v2490_v50  ;;  %v2632_v30 = vld [vmem:[#allocation11 + $0x4c] sm:$0xf0] }
 0x446   :  { %v1351_v56 = vsel %vm778_vm13, %v1287_v51, %v2698_v47  ;;  %v1352_v1 = vsel %vm778_vm13, %v1288_v7, %v2699_v48  ;;  %v2496_v48 = vld [vmem:[#allocation11 + $0xe8] sm:$0xf]  ;;  %v2653_v47 = vld [vmem:[#allocation11 + $0xf4] sm:$0xf0]  ;;  %v2651_v51 = vld [vmem:[#allocation11 + $0xec] sm:$0xf]  ;;  %v2409_v50 = vor.u32 %v2632_v30, %v2408_v46 }
 0x447   :  { %v2498_v7 = vld [vmem:[#allocation11 + $0xf8] sm:$0xf0]  ;;  %1739 = vmatpush.bf16.msrb.mxu3 %v2493_v2  ;;  %v2633_v2 = vld [vmem:[#allocation11 + $0x54] sm:$0xf0] }
 0x44e   :  { %v2692_v52 = vpop.permute.xlu0 %2691 }
 0x44f   :  { %v2694_v57 = vunpack.i.h.bf16 %v2692_v52  ;;  %v2693_v49 = vunpack.i.l.bf16 %v2692_v52  ;;  %v2497_v52 = vor.u32 %v2653_v47, %v2496_v48  ;;  %v2410_v48 = vld [vmem:[#allocation11 + $0x50] sm:$0xf0]  ;;  %v2416_v47 = vld [vmem:[#allocation11 + $0x48] sm:$0xf] }
 0x451   :  { %1758 = vmatpush.bf16.msra.mxu0 %v2497_v52  ;;  %v2413_v52 = vor.u32 %v2630_v32, %v2410_v48 }
 0x463   :  { %v2702_v53 = vpop.permute.xlu1 %2701 }
 0x464   :  { %v2704_v54 = vunpack.i.h.bf16 %v2702_v53  ;;  %v2703_v13 = vunpack.i.l.bf16 %v2702_v53  ;;  %v2501_v53 = vor.u32 %v2651_v51, %v2498_v7  ;;  %v2417_v51 = vor.u32 %v2633_v2, %v2416_v47  ;;  %v2631_v7 = vld [vmem:[#allocation11 + $0x4c] sm:$0xf] }
 0x466   :  { %v1356_v0 = vsel %vm1355_vm14, %v1351_v56, %v2703_v13  ;;  %v1357_v63 = vsel %vm1355_vm14, %v1352_v1, %v2704_v54  ;;  %v2472_v54 = vld [vmem:[#allocation11 + $0xc0] sm:$0xf]  ;;  %v2648_v13 = vld [vmem:[#allocation11 + $0xcc] sm:$0xf0]  ;;  %v2646_v56 = vld [vmem:[#allocation11 + $0xc4] sm:$0xf]  ;;  %1777 = vmatpush.bf16.msra.mxu1 %v2501_v53 }
 0x467   :  { %v1361_v16 = vsel %vm1360_vm15, %v1356_v0, %v2693_v49  ;;  %v1362_v3 = vsel %vm1360_vm15, %v1357_v63, %v2694_v57  ;;  %v2473_v1 = vor.u32 %v2648_v13, %v2472_v54  ;;  %v2474_v57 = vld [vmem:[#allocation11 + $0xd0] sm:$0xf0]  ;;  %v2480_v49 = vld [vmem:[#allocation11 + $0xc8] sm:$0xf]  ;;  %v2649_v0 = vld [vmem:[#allocation11 + $0xd4] sm:$0xf0] }
 0x468   :  { %v1365_v15 = vpack.c.bf16 %v1362_v3, %v1361_v16  ;;  %v2477_v63 = vor.u32 %v2646_v56, %v2474_v57  ;;  %v2481_v16 = vor.u32 %v2649_v0, %v2480_v49  ;;  %v2647_v3 = vld [vmem:[#allocation11 + $0xcc] sm:$0xf]  ;;  %v2418_v53 = vld [vmem:[#allocation11 + $0x58] sm:$0xf0]  ;;  %v2392_v13 = vld [vmem:[#allocation11 + $0x20] sm:$0xf] }
 0x469   :  { %1721 = vmatpush.bf16.msrb.mxu2 %v2473_v1  ;;  %v2421_v54 = vor.u32 %v2631_v7, %v2418_v53  ;;  %v2628_v56 = vld [vmem:[#allocation11 + $0x2c] sm:$0xf0]  ;;  %v2626_v1 = vld [vmem:[#allocation11 + $0x24] sm:$0xf]  ;;  %v2394_v49 = vld [vmem:[#allocation11 + $0x30] sm:$0xf0] }
 0x46a   :  { %1439 = vmatmul.bf16.vlgmr.msrb.gmra.mxu1 %v1365_v15  ;;  %v2482_v15 = vld [vmem:[#allocation11 + $0xd8] sm:$0xf0]  ;;  %1740 = vmatpush.bf16.msrb.mxu3 %v2477_v63  ;;  %v2393_v57 = vor.u32 %v2628_v56, %v2392_v13  ;;  %v2400_v0 = vld [vmem:[#allocation11 + $0x28] sm:$0xf]  ;;  %v2629_v63 = vld [vmem:[#allocation11 + $0x34] sm:$0xf0] }
 0x46b   :  { %v2707_v6 = vpop.permute.xlu1 %2706  ;;  %1759 = vmatpush.bf16.msra.mxu0 %v2481_v16  ;;  %v2397_v16 = vor.u32 %v2626_v1, %v2394_v49 }
 0x46c   :  { %v2709_v18 = vunpack.i.h.bf16 %v2707_v6  ;;  %v2708_v59 = vunpack.i.l.bf16 %v2707_v6  ;;  %v2485_v6 = vor.u32 %v2647_v3, %v2482_v15  ;;  %v2401_v3 = vor.u32 %v2629_v63, %v2400_v0  ;;  %v2627_v15 = vld [vmem:[#allocation11 + $0x2c] sm:$0xf] }
 0x46e   :  { %1778 = vmatpush.bf16.msra.mxu1 %v2485_v6  ;;  %v2402_v6 = vld [vmem:[#allocation11 + $0x38] sm:$0xf0] }
 0x473   :  { %v2712_v9 = vpop.permute.xlu1 %2711 }
 0x474   :  { %v2714_v17 = vunpack.i.h.bf16 %v2712_v9  ;;  %v2713_v20 = vunpack.i.l.bf16 %v2712_v9  ;;  %v2642_v9 = vld [vmem:[#allocation11 + $0xa4] sm:$0xf] }
 0x479   :  { %v1046_v4 = vpop.xlane.xlu0 %1045 }
 0x47a   :  { %2792 = vrcp.f32 %v1046_v4  ;;  %v2456_v4 = vld [vmem:[#allocation11 + $0xa0] sm:$0xf] }
 0x47b   :  { %v2717_v61 = vpop.permute.xlu1 %2716 }
 0x47c   :  { %v2719_v24 = vunpack.i.h.bf16 %v2717_v61  ;;  %v2718_v25 = vunpack.i.l.bf16 %v2717_v61 }
 0x480   :  { %v2793_v11 = vpop.eup %2792 }
 0x481   :  { %v1290_v62 = vmul.f32 %v2793_v11, %v1139_v12  ;;  %v2464_v12 = vld [vmem:[#allocation11 + $0xa8] sm:$0xf] }
 0x483   :  { %v1354_v60 = vsel %vm778_vm13, %v1290_v62, %v2709_v18  ;;  %v2645_v62 = vld [vmem:[#allocation11 + $0xb4] sm:$0xf0] }
 0x484   :  { %v1359_v22 = vsel %vm1355_vm14, %v1354_v60, %v2714_v17  ;;  %v2465_v60 = vor.u32 %v2645_v62, %v2464_v12  ;;  %v2466_v17 = vld [vmem:[#allocation11 + $0xb8] sm:$0xf0]  ;;  %v2378_v62 = vld [vmem:[#allocation11 + $0x10] sm:$0xf0] }
 0x485   :  { %v1043_v55 = vpop.xlane.xlu2 %1042  ;;  %v1364_v10 = vsel %vm1360_vm15, %v1359_v22, %v2719_v24  ;;  %v2442_v24 = vld [vmem:[#allocation11 + $0x90] sm:$0xf0] }
 0x486   :  { %2794 = vrcp.f32 %v1043_v55  ;;  %v2458_v55 = vld [vmem:[#allocation11 + $0xb0] sm:$0xf0]  ;;  %1760 = vmatpush.bf16.msra.mxu0 %v2465_v60  ;;  %v2625_v60 = vld [vmem:[#allocation11 + $0x14] sm:$0xf0] }
 0x487   :  { %v2461_v18 = vor.u32 %v2642_v9, %v2458_v55  ;;  %v2624_v9 = vld [vmem:[#allocation11 + $0xc] sm:$0xf0] }
 0x489   :  { %1741 = vmatpush.bf16.msrb.mxu3 %v2461_v18  ;;  %v2384_v18 = vld [vmem:[#allocation11 + $0x8] sm:$0xf] }
 0x48c   :  { %v2795_v14 = vpop.eup %2794 }
 0x48d   :  { %v1289_v19 = vmul.f32 %v2795_v14, %v1137_v8  ;;  %v2644_v8 = vld [vmem:[#allocation11 + $0xac] sm:$0xf0]  ;;  %v2643_v14 = vld [vmem:[#allocation11 + $0xac] sm:$0xf] }
 0x48e   :  { %v2457_v11 = vor.u32 %v2644_v8, %v2456_v4  ;;  %v2469_v61 = vor.u32 %v2643_v14, %v2466_v17  ;;  %v2405_v4 = vor.u32 %v2627_v15, %v2402_v6  ;;  %v2376_v8 = vld [vmem:[#allocation11] sm:$0xf] }
 0x48f   :  { %v1353_v26 = vsel %vm778_vm13, %v1289_v19, %v2708_v59  ;;  %v2440_v59 = vld [vmem:[#allocation11 + $0x80] sm:$0xf]  ;;  %v2640_v19 = vld [vmem:[#allocation11 + $0x8c] sm:$0xf0]  ;;  %v2377_v12 = vor.u32 %v2624_v9, %v2376_v8 }
 0x490   :  { %v1358_v28 = vsel %vm1355_vm14, %v1353_v26, %v2713_v20  ;;  %1722 = vmatpush.bf16.msrb.mxu2 %v2457_v11  ;;  %v2638_v20 = vld [vmem:[#allocation11 + $0x84] sm:$0xf]  ;;  %1779 = vmatpush.bf16.msra.mxu1 %v2469_v61  ;;  %v2441_v22 = vor.u32 %v2640_v19, %v2440_v59  ;;  %v2641_v26 = vld [vmem:[#allocation11 + $0x94] sm:$0xf0]  ;;  %v2385_v61 = vor.u32 %v2625_v60, %v2384_v18  ;;  %v2623_v59 = vld [vmem:[#allocation11 + $0xc] sm:$0xf] }
 0x491   :  { %v1363_v29 = vsel %vm1360_vm15, %v1358_v28, %v2718_v25  ;;  %v2448_v25 = vld [vmem:[#allocation11 + $0x88] sm:$0xf]  ;;  %v2445_v28 = vor.u32 %v2638_v20, %v2442_v24  ;;  %v2622_v11 = vld [vmem:[#allocation11 + $0x4] sm:$0xf]  ;;  %v2386_v19 = vld [vmem:[#allocation11 + $0x18] sm:$0xf0] }
 0x492   :  { %v1366_v23 = vpack.c.bf16 %v1364_v10, %v1363_v29  ;;  %v2449_v29 = vor.u32 %v2641_v26, %v2448_v25  ;;  %v2639_v10 = vld [vmem:[#allocation11 + $0x8c] sm:$0xf]  ;;  %v2381_v17 = vor.u32 %v2622_v11, %v2378_v62  ;;  %v2389_v20 = vor.u32 %v2623_v59, %v2386_v19  ;;  %v2660_v62 = vld [vmem:[#allocation13 + $0x30] sm:$0xff]  ;;  %v2657_v59 = vld [vmem:[#allocation13 + $0x18] sm:$0xff] }
 0x493   :  { %1742 = vmatpush.bf16.msrb.mxu3 %v2445_v28  ;;  %v2668_v18 = vld [vmem:[#allocation13 + $0x70] sm:$0xff]  ;;  %v2659_v60 = vld [vmem:[#allocation13 + $0x28] sm:$0xff]  ;;  %v2665_v19 = vld [vmem:[#allocation13 + $0x58] sm:$0xff] }
 0x494   :  { %1444 = vmatmul.bf16.gmra.mxu1 %v1366_v23  ;;  %v2450_v23 = vld [vmem:[#allocation11 + $0x98] sm:$0xf0]  ;;  %1723 = vmatpush.bf16.msrb.mxu2 %v2441_v22 }
 0x495   :  { %1761 = vmatpush.bf16.msra.mxu0 %v2449_v29 }
 0x4e7   :  { %v1440_v31 = vpop.f32.mrf.mxu1 }
 0x4e8   :  { %v3539_v21 = vadd.f32 %v2836_v45, %v1440_v31  ;;  %v2453_v31 = vor.u32 %v2639_v10, %v2450_v23  ;;  %v2424_v45 = vld [vmem:[#allocation11 + $0x60] sm:$0xf] }
 0x4ea   :  { %v1455_v33 = vmul.f32 %v3539_v21, %v3539_v21  ;;  %1780 = vmatpush.bf16.msra.mxu1 %v2453_v31 }
 0x4ec   :  { %1459 = vadd.xlane.f32.xlu1 %v1455_v33  ;;  %v2636_v33 = vld [vmem:[#allocation11 + $0x6c] sm:$0xf0] }
 0x4ef   :  { %v1442_v35 = vpop.f32.mrf.mxu1 }
 0x4f0   :  { %v3543_v37 = vadd.f32 %v2837_v36, %v1442_v35  ;;  %v2634_v35 = vld [vmem:[#allocation11 + $0x64] sm:$0xf]  ;;  %v2425_v36 = vor.u32 %v2636_v33, %v2424_v45 }
 0x4f2   :  { %v1456_v38 = vmul.f32 %v3543_v37, %v3543_v37  ;;  %1724 = vmatpush.bf16.msrb.mxu2 %v2425_v36 }
 0x4f4   :  { %1461 = vadd.xlane.f32.xlu2 %v1456_v38  ;;  %v2426_v38 = vld [vmem:[#allocation11 + $0x70] sm:$0xf0] }
 0x4f6   :  { %1725 = vmatpush.bf16.msrb.mxu2 %v2409_v50 }
 0x4fa   :  { %1726 = vmatpush.bf16.msrb.mxu2 %v2393_v57 }
 0x4fe   :  { %1727 = vmatpush.bf16.msrb.mxu2 %v2377_v12  ;;  %v2669_v12 = vld [vmem:[#allocation13 + $0x78] sm:$0xff] }
 0x511   :  { %v1445_v58 = vpop.f32.mrf.mxu1 }
 0x512   :  { %v3547_v40 = vadd.f32 %v2838_v39, %v1445_v58  ;;  %v2432_v58 = vld [vmem:[#allocation11 + $0x68] sm:$0xf]  ;;  %v2637_v39 = vld [vmem:[#allocation11 + $0x74] sm:$0xf0] }
 0x514   :  { %v1457_v41 = vmul.f32 %v3547_v40, %v3547_v40 }
 0x516   :  { %1463 = vadd.xlane.f32.xlu0 %v1457_v41  ;;  %v2429_v41 = vor.u32 %v2634_v35, %v2426_v38 }
 0x518   :  { %1743 = vmatpush.bf16.msrb.mxu3 %v2429_v41 }
 0x519   :  { %v1447_v42 = vpop.f32.mrf.mxu1 }
 0x51a   :  { %v3551_v5 = vadd.f32 %v2839_v43, %v1447_v42  ;;  %v2433_v42 = vor.u32 %v2637_v39, %v2432_v58  ;;  %v2635_v43 = vld [vmem:[#allocation11 + $0x6c] sm:$0xf] }
 0x51c   :  { %v1458_v27 = vmul.f32 %v3551_v5, %v3551_v5  ;;  %1762 = vmatpush.bf16.msra.mxu0 %v2433_v42  ;;  %1744 = vmatpush.bf16.msrb.mxu3 %v2413_v52 }
 0x51e   :  { %1465 = vadd.xlane.f32.xlu2 %v1458_v27  ;;  %v2434_v27 = vld [vmem:[#allocation11 + $0x78] sm:$0xf0] }
 0x51f   :  { %v2437_v44 = vor.u32 %v2635_v43, %v2434_v27  ;;  %v2721_v43 = vld [vmem:[%s3637_s5] ss:$0 sm:$0xff]  ;;  %s3137_s5 = smov [#allocation19]  }
 0x520   :  { %1763 = vmatpush.bf16.msra.mxu0 %v2417_v51  ;;  %1745 = vmatpush.bf16.msrb.mxu3 %v2397_v16  ;;  %s2146_s1 = sshll.u32 %s3137_s5, 4  ;;  %s2147_s1 = int_to_ptr.vmem [resolvable:$true] %s2146_s1 }
 0x521   :  { %1781 = vmatpush.bf16.msra.mxu1 %v2437_v44 }
 0x524   :  { %1764 = vmatpush.bf16.msra.mxu0 %v2401_v3  ;;  %1746 = vmatpush.bf16.msrb.mxu3 %v2381_v17  ;;  %v2658_v17 = vld [vmem:[#allocation13 + $0x20] sm:$0xff] }
 0x525   :  { %1782 = vmatpush.bf16.msra.mxu1 %v2421_v54 }
 0x528   :  { %1765 = vmatpush.bf16.msra.mxu0 %v2385_v61  ;;  %2115 = vmatpush.bf16.msra.mxu3 %v2669_v12  ;;  %v2666_v61 = vld [vmem:[#allocation13 + $0x60] sm:$0xff] }
 0x529   :  { %1783 = vmatpush.bf16.msra.mxu1 %v2405_v4 }
 0x52c   :  { %2116 = vmatpush.bf16.msra.mxu3 %v2668_v18 }
 0x52d   :  { %1784 = vmatpush.bf16.msra.mxu1 %v2389_v20 }
 0x55f   :  { %v1460_v55 = vpop.xlane.xlu1 %1459 }
 0x560   :  { %v1467_v14 = vmul.f32 %v1460_v55, %v3272_v34  ;;  %v2661_v55 = vld [vmem:[#allocation13 + $0x38] sm:$0xff] }
 0x561   :  { %2096 = vmatpush.bf16.msra.mxu2 %v2661_v55 }
 0x562   :  { %v1471_v22 = vadd.f32 1e-06, %v1467_v14  ;;  %v2667_v14 = vld [vmem:[#allocation13 + $0x68] sm:$0xff] }
 0x563   :  { %2117 = vmatpush.bf16.msra.mxu3 %v2667_v14 }
 0x564   :  { %2796 = vrsqrt.f32 %v1471_v22  ;;  %vm1481_vm1 = vweird.f32 %v1471_v22 }
 0x565   :  { %2097 = vmatpush.bf16.msra.mxu2 %v2660_v62 }
 0x567   :  { %v1462_v24 = vpop.xlane.xlu2 %1461  ;;  %2118 = vmatpush.bf16.msra.mxu3 %v2666_v61 }
 0x568   :  { %v1468_v25 = vmul.f32 %v1462_v24, %v3272_v34 }
 0x569   :  { %2098 = vmatpush.bf16.msra.mxu2 %v2659_v60 }
 0x56a   :  { %v2797_v26 = vpop.eup %2796  ;;  %v1472_v28 = vadd.f32 1e-06, %v1468_v25 }
 0x56b   :  { %v1476_v29 = vmul.f32 %v2797_v26, %v1471_v22  ;;  %vm1482_vm0 = vweird.f32 %v2797_v26  ;;  %2119 = vmatpush.bf16.msra.mxu3 %v2665_v19 }
 0x56c   :  { %2798 = vrsqrt.f32 %v1472_v28  ;;  %vm1483_vm2 = vmor %vm1481_vm1, %vm1482_vm0  ;;  %vm1491_vm4 = vweird.f32 %v1472_v28 }
 0x56d   :  { %v1477_v10 = vmul.f32 %v2797_v26, %v1476_v29  ;;  %2099 = vmatpush.bf16.msra.mxu2 %v2658_v17  ;;  %v2655_v29 = vld [vmem:[#allocation13 + $0x8] sm:$0xff] }
 0x56f   :  { %v1478_v23 = vmul.f32 0.5, %v1477_v10  ;;  %v2663_v10 = vld [vmem:[#allocation13 + $0x48] sm:$0xff] }
 0x571   :  { %v1479_v31 = vsub.f32 1.5, %v1478_v23  ;;  %2100 = vmatpush.bf16.msra.mxu2 %v2657_v59 }
 0x572   :  { %v2799_v45 = vpop.eup %2798 }
 0x573   :  { %v1486_v33 = vmul.f32 %v2799_v45, %v1472_v28  ;;  %v1480_v35 = vmul.f32 %v2797_v26, %v1479_v31  ;;  %vm1492_vm3 = vweird.f32 %v2799_v45  ;;  %v2664_v28 = vld [vmem:[#allocation13 + $0x50] sm:$0xff] }
 0x574   :  { %vm1493_vm5 = vmor %vm1491_vm4, %vm1492_vm3  ;;  %2120 = vmatpush.bf16.msra.mxu3 %v2664_v28 }
 0x575   :  { %v1487_v36 = vmul.f32 %v2799_v45, %v1486_v33  ;;  %v1484_v58 = vsel %vm1483_vm2, %v2797_v26, %v1480_v35  ;;  %v2656_v26 = vld [vmem:[#allocation13 + $0x10] sm:$0xff] }
 0x576   :  { %v1515_v42 = vmul.f32 %v1484_v58, %v3539_v21  ;;  %2101 = vmatpush.bf16.msra.mxu2 %v2656_v26  ;;  %v2654_v58 = vld [vmem:[#allocation13] sm:$0xff] }
 0x577   :  { %v1488_v38 = vmul.f32 0.5, %v1487_v36 }
 0x578   :  { %v1522_v46 = vmul.f32 %v2721_v43, %v1515_v42  ;;  %2121 = vmatpush.bf16.msra.mxu3 %v2663_v10 }
 0x579   :  { %v1489_v39 = vsub.f32 1.5, %v1488_v38 }
 0x57a   :  { %2102 = vmatpush.bf16.msra.mxu2 %v2655_v29 }
 0x57b   :  { %v1490_v41 = vmul.f32 %v2799_v45, %v1489_v39  ;;  %v2662_v39 = vld [vmem:[#allocation13 + $0x40] sm:$0xff] }
 0x57c   :  { %2122 = vmatpush.bf16.msra.mxu3 %v2662_v39 }
 0x57d   :  { %v1494_v27 = vsel %vm1493_vm5, %v2799_v45, %v1490_v41 }
 0x57e   :  { %v1516_v44 = vmul.f32 %v1494_v27, %v3543_v37  ;;  %2103 = vmatpush.bf16.msra.mxu2 %v2654_v58 }
 0x580   :  { %v1523_v30 = vmul.f32 %v2721_v43, %v1516_v44 }
 0x582   :  { %v1526_v32 = vpack.c.bf16 %v1523_v30, %v1522_v46 }
 0x584   :  { %1728 = vmatmul.bf16.vlgmr.msrb.gmra.mxu2 %v1526_v32  ;;  %1747 = vmatmul.bf16.vlgmr.msrb.gmra.mxu3 %v1526_v32 }
 0x585   :  { %1766 = vmatmul.bf16.vlgmr.msra.gmra.mxu0 %v1526_v32  ;;  %1785 = vmatmul.bf16.vlgmr.msra.gmra.mxu1 %v1526_v32 }
 0x589   :  { %v1464_v50 = vpop.xlane.xlu0 %1463 }
 0x58a   :  { %v1469_v48 = vmul.f32 %v1464_v50, %v3272_v34 }
 0x58c   :  { %v1473_v47 = vadd.f32 1e-06, %v1469_v48 }
 0x58e   :  { %2800 = vrsqrt.f32 %v1473_v47  ;;  %vm1501_vm7 = vweird.f32 %v1473_v47 }
 0x591   :  { %v1466_v2 = vpop.xlane.xlu2 %1465 }
 0x592   :  { %v1470_v52 = vmul.f32 %v1466_v2, %v3272_v34 }
 0x594   :  { %v2801_v51 = vpop.eup %2800  ;;  %v1474_v7 = vadd.f32 1e-06, %v1470_v52 }
 0x595   :  { %v1496_v53 = vmul.f32 %v2801_v51, %v1473_v47  ;;  %vm1502_vm6 = vweird.f32 %v2801_v51 }
 0x596   :  { %2802 = vrsqrt.f32 %v1474_v7  ;;  %vm1503_vm8 = vmor %vm1501_vm7, %vm1502_vm6  ;;  %vm1511_vm10 = vweird.f32 %v1474_v7 }
 0x597   :  { %v1497_v54 = vmul.f32 %v2801_v51, %v1496_v53 }
 0x599   :  { %v1498_v13 = vmul.f32 0.5, %v1497_v54 }
 0x59b   :  { %v1499_v56 = vsub.f32 1.5, %v1498_v13 }
 0x59c   :  { %v2803_v1 = vpop.eup %2802 }
 0x59d   :  { %v1506_v57 = vmul.f32 %v2803_v1, %v1474_v7  ;;  %v1500_v49 = vmul.f32 %v2801_v51, %v1499_v56  ;;  %vm1512_vm9 = vweird.f32 %v2803_v1 }
 0x59e   :  { %vm1513_vm11 = vmor %vm1511_vm10, %vm1512_vm9 }
 0x59f   :  { %v1507_v0 = vmul.f32 %v2803_v1, %v1506_v57  ;;  %v1504_v16 = vsel %vm1503_vm8, %v2801_v51, %v1500_v49 }
 0x5a0   :  { %v1517_v34 = vmul.f32 %v1504_v16, %v3547_v40 }
 0x5a1   :  { %v1508_v63 = vmul.f32 0.5, %v1507_v0 }
 0x5a2   :  { %v1524_v8 = vmul.f32 %v2721_v43, %v1517_v34 }
 0x5a3   :  { %v1509_v3 = vsub.f32 1.5, %v1508_v63 }
 0x5a5   :  { %v1510_v15 = vmul.f32 %v2803_v1, %v1509_v3 }
 0x5a7   :  { %v1514_v6 = vsel %vm1513_vm11, %v2803_v1, %v1510_v15 }
 0x5a8   :  { %v1518_v4 = vmul.f32 %v1514_v6, %v3551_v5 }
 0x5aa   :  { %v1525_v9 = vmul.f32 %v2721_v43, %v1518_v4 }
 0x5ac   :  { %v1527_v11 = vpack.c.bf16 %v1525_v9, %v1524_v8 }
 0x5ae   :  { %1733 = vmatmul.bf16.gmra.mxu2 %v1527_v11  ;;  %1752 = vmatmul.bf16.gmra.mxu3 %v1527_v11 }
 0x5af   :  { %1771 = vmatmul.bf16.gmra.mxu0 %v1527_v11  ;;  %1790 = vmatmul.bf16.gmra.mxu1 %v1527_v11 }
 0x602   :  { %v1767_v56 = vpop.f32.mrf.mxu0  ;;  %v1786_v4 = vpop.f32.mrf.mxu1 }
 0x607   :  { %v3566_v20 = vpop.f32.mrf.mxu2  ;;  %v3568_v22 = vpop.f32.mrf.mxu3 }
 0x608   :  { %v2502_v24 = vmul.f32 -1.442695, %v3566_v20  ;;  %v2503_v25 = vmul.f32 -1.442695, %v3568_v22 }
 0x60a   :  { %2804 = vpow2.f32 %v2502_v24  ;;  %v1788_v39 = vpop.f32.mrf.mxu1 }
 0x60b   :  { %2806 = vpow2.f32 %v2503_v25 }
 0x60f   :  { %v3572_v23 = vpop.f32.mrf.mxu2  ;;  %v3574_v31 = vpop.f32.mrf.mxu3 }
 0x610   :  { %v2805_v45 = vpop.eup %2804  ;;  %v2504_v33 = vmul.f32 -1.442695, %v3572_v23  ;;  %v2505_v38 = vmul.f32 -1.442695, %v3574_v31 }
 0x611   :  { %v2807_v35 = vpop.eup %2806  ;;  %v1820_v36 = vadd.f32 1.0, %v2805_v45 }
 0x612   :  { %v1821_v41 = vadd.f32 1.0, %v2807_v35  ;;  %2808 = vpow2.f32 %v2504_v33  ;;  %v1769_v33 = vpop.f32.mrf.mxu0 }
 0x613   :  { %2810 = vrcp.f32 %v1820_v36  ;;  %v1839_v53 = vand.u32 2147483648, %v1820_v36  ;;  %vm1833_vm13 = vweird.f32 %v1820_v36  ;;  %v1837_v54 = vand.u32 2147483647, %v1820_v36 }
 0x614   :  { %2812 = vrcp.f32 %v1821_v41  ;;  %v1852_v49 = vand.u32 2147483647, %v1821_v41  ;;  %v1854_v16 = vand.u32 2147483648, %v1821_v41  ;;  %vm1848_vm0 = vweird.f32 %v1821_v41 }
 0x615   :  { %2814 = vpow2.f32 %v2505_v38  ;;  %v1840_v15 = vor.u32 1.1754944e-38, %v1839_v53  ;;  %vm1838_vm1 = vcmp.eq.f32.partialorder %v1837_v54, 8.507059e+37 }
 0x616   :  { %vm1853_vm4 = vcmp.eq.f32.partialorder %v1852_v49, 8.507059e+37  ;;  %v1855_v18 = vor.u32 1.1754944e-38, %v1854_v16 }
 0x618   :  { %v2809_v42 = vpop.eup %2808 }
 0x619   :  { %v2811_v43 = vpop.eup %2810  ;;  %v1822_v27 = vadd.f32 1.0, %v2809_v42 }
 0x61a   :  { %v2813_v44 = vpop.eup %2812  ;;  %v1829_v46 = vmul.f32 %v2811_v43, %v1820_v36  ;;  %vm1834_vm12 = vweird.f32 %v2811_v43 }
 0x61b   :  { %v2815_v30 = vpop.eup %2814  ;;  %v1844_v32 = vmul.f32 %v2813_v44, %v1821_v41  ;;  %2816 = vrcp.f32 %v1822_v27  ;;  %vm3578_vm14 = vmor %vm1833_vm13, %vm1834_vm12  ;;  %vm1849_vm15 = vweird.f32 %v2813_v44  ;;  %v1869_v34 = vand.u32 2147483648, %v1822_v27 }
 0x61c   :  { %v1830_v50 = vsub.f32 1.0, %v1829_v46  ;;  %v1823_v48 = vadd.f32 1.0, %v2815_v30  ;;  %vm3584_vm2 = vmor %vm1848_vm0, %vm1849_vm15  ;;  %v1867_v11 = vand.u32 2147483647, %v1822_v27  ;;  %vm1863_vm5 = vweird.f32 %v1822_v27 }
 0x61d   :  { %v1845_v47 = vsub.f32 1.0, %v1844_v32  ;;  %v1870_v17 = vor.u32 1.1754944e-38, %v1869_v34 }
 0x61e   :  { %v1831_v2 = vmul.f32 %v2811_v43, %v1830_v50  ;;  %2818 = vrcp.f32 %v1823_v48  ;;  %v1884_v14 = vand.u32 2147483648, %v1823_v48  ;;  %v1882_v59 = vand.u32 2147483647, %v1823_v48 }
 0x61f   :  { %v1846_v52 = vmul.f32 %v2813_v44, %v1845_v47  ;;  %vm1868_vm8 = vcmp.eq.f32.partialorder %v1867_v11, 8.507059e+37  ;;  %vm1878_vm9 = vweird.f32 %v1823_v48 }
 0x620   :  { %v1832_v51 = vadd.f32 %v2811_v43, %v1831_v2  ;;  %v1885_v10 = vor.u32 1.1754944e-38, %v1884_v14  ;;  %vm1883_vm11 = vcmp.eq.f32.partialorder %v1882_v59, 8.507059e+37 }
 0x621   :  { %v2817_v7 = vpop.eup %2816  ;;  %v1847_v57 = vadd.f32 %v2813_v44, %v1846_v52 }
 0x622   :  { %v1859_v13 = vmul.f32 %v2817_v7, %v1822_v27  ;;  %v1836_v63 = vsel %vm3578_vm14, %v2811_v43, %v1832_v51  ;;  %vm1864_vm3 = vweird.f32 %v2817_v7 }
 0x623   :  { %v1841_v55 = vsel %vm1838_vm1, %v1840_v15, %v1836_v63  ;;  %v1851_v12 = vsel %vm3584_vm2, %v2813_v44, %v1847_v57  ;;  %vm1865_vm6 = vmor %vm1863_vm5, %vm1864_vm3 }
 0x624   :  { %v2819_v0 = vpop.eup %2818  ;;  %v1860_v3 = vsub.f32 1.0, %v1859_v13  ;;  %v1948_v19 = vmul.f32 %v1841_v55, %v3566_v20  ;;  %v1856_v24 = vsel %vm1853_vm4, %v1855_v18, %v1851_v12 }
 0x625   :  { %v1874_v6 = vmul.f32 %v2819_v0, %v1823_v48  ;;  %vm1879_vm7 = vweird.f32 %v2819_v0  ;;  %v1949_v45 = vmul.f32 %v1856_v24, %v3568_v22 }
 0x626   :  { %v1861_v9 = vmul.f32 %v2817_v7, %v1860_v3  ;;  %vm1880_vm10 = vmor %vm1878_vm9, %vm1879_vm7  ;;  %v1956_v36 = vmul.f32 %v1948_v19, %v1767_v56 }
 0x627   :  { %v1875_v62 = vsub.f32 1.0, %v1874_v6  ;;  %v1957_v42 = vmul.f32 %v1949_v45, %v1786_v4 }
 0x628   :  { %v1862_v60 = vadd.f32 %v2817_v7, %v1861_v9 }
 0x629   :  { %v1876_v61 = vmul.f32 %v2819_v0, %v1875_v62 }
 0x62a   :  { %v1866_v25 = vsel %vm1865_vm6, %v2817_v7, %v1862_v60 }
 0x62b   :  { %v1871_v26 = vsel %vm1868_vm8, %v1870_v17, %v1866_v25  ;;  %v1877_v28 = vadd.f32 %v2819_v0, %v1876_v61 }
 0x62c   :  { %v1950_v29 = vmul.f32 %v1871_v26, %v3572_v23  ;;  %v1772_v8 = vpop.f32.mrf.mxu0  ;;  %v1791_v59 = vpop.f32.mrf.mxu1 }
 0x62d   :  { %v1881_v35 = vsel %vm1880_vm10, %v2819_v0, %v1877_v28 }
 0x62e   :  { %v1958_v38 = vmul.f32 %v1950_v29, %v1769_v33  ;;  %v1886_v58 = vsel %vm1883_vm11, %v1885_v10, %v1881_v35 }
 0x62f   :  { %v1951_v20 = vmul.f32 %v1886_v58, %v3574_v31 }
 0x630   :  { %v1964_v41 = vpack.c.bf16 %v1958_v38, %v1956_v36 }
 0x631   :  { %v1959_v43 = vmul.f32 %v1951_v20, %v1788_v39  ;;  %v3594_v27 = vpop.f32.mrf.mxu2  ;;  %v3596_v44 = vpop.f32.mrf.mxu3 }
 0x632   :  { %v2506_v23 = vmul.f32 -1.442695, %v3594_v27  ;;  %v2507_v22 = vmul.f32 -1.442695, %v3596_v44  ;;  %2104 = vmatmul.bf16.vlgmr.msra.gmra.mxu2 %v1964_v41 }
 0x633   :  { %v1965_v46 = vpack.c.bf16 %v1959_v43, %v1957_v42 }
 0x634   :  { %2820 = vpow2.f32 %v2506_v23 }
 0x635   :  { %2822 = vpow2.f32 %v2507_v22  ;;  %2123 = vmatmul.bf16.vlgmr.msra.gmra.mxu3 %v1965_v46  ;;  %v1774_v46 = vpop.f32.mrf.mxu0 }
 0x639   :  { %v3600_v30 = vpop.f32.mrf.mxu2  ;;  %v3602_v31 = vpop.f32.mrf.mxu3 }
 0x63a   :  { %v2821_v32 = vpop.eup %2820  ;;  %v2508_v50 = vmul.f32 -1.442695, %v3600_v30  ;;  %v2509_v2 = vmul.f32 -1.442695, %v3602_v31 }
 0x63b   :  { %v2823_v48 = vpop.eup %2822  ;;  %v1824_v47 = vadd.f32 1.0, %v2821_v32 }
 0x63c   :  { %v1825_v52 = vadd.f32 1.0, %v2823_v48  ;;  %2824 = vpow2.f32 %v2508_v50 }
 0x63d   :  { %2826 = vrcp.f32 %v1824_v47  ;;  %v1899_v34 = vand.u32 2147483648, %v1824_v47  ;;  %vm1893_vm13 = vweird.f32 %v1824_v47  ;;  %v1897_v6 = vand.u32 2147483647, %v1824_v47 }
 0x63e   :  { %2828 = vrcp.f32 %v1825_v52  ;;  %v1912_v55 = vand.u32 2147483647, %v1825_v52  ;;  %v1914_v18 = vand.u32 2147483648, %v1825_v52  ;;  %vm1908_vm0 = vweird.f32 %v1825_v52 }
 0x63f   :  { %2830 = vpow2.f32 %v2509_v2  ;;  %v1900_v14 = vor.u32 1.1754944e-38, %v1899_v34  ;;  %vm1898_vm1 = vcmp.eq.f32.partialorder %v1897_v6, 8.507059e+37  ;;  %v1793_v2 = vpop.f32.mrf.mxu1 }
 0x640   :  { %vm1913_vm4 = vcmp.eq.f32.partialorder %v1912_v55, 8.507059e+37  ;;  %v1915_v10 = vor.u32 1.1754944e-38, %v1914_v18 }
 0x642   :  { %v2825_v51 = vpop.eup %2824 }
 0x643   :  { %v2827_v7 = vpop.eup %2826  ;;  %v1826_v53 = vadd.f32 1.0, %v2825_v51 }
 0x644   :  { %v2829_v54 = vpop.eup %2828  ;;  %v1889_v13 = vmul.f32 %v2827_v7, %v1824_v47  ;;  %vm1894_vm12 = vweird.f32 %v2827_v7 }
 0x645   :  { %v2831_v56 = vpop.eup %2830  ;;  %v1904_v1 = vmul.f32 %v2829_v54, %v1825_v52  ;;  %2832 = vrcp.f32 %v1826_v53  ;;  %vm3606_vm14 = vmor %vm1893_vm13, %vm1894_vm12  ;;  %vm1909_vm15 = vweird.f32 %v2829_v54  ;;  %v1929_v17 = vand.u32 2147483648, %v1826_v53 }
 0x646   :  { %v1890_v57 = vsub.f32 1.0, %v1889_v13  ;;  %v1827_v49 = vadd.f32 1.0, %v2831_v56  ;;  %vm3612_vm2 = vmor %vm1908_vm0, %vm1909_vm15  ;;  %v1927_v25 = vand.u32 2147483647, %v1826_v53  ;;  %vm1923_vm5 = vweird.f32 %v1826_v53 }
 0x647   :  { %v1905_v0 = vsub.f32 1.0, %v1904_v1  ;;  %v1930_v35 = vor.u32 1.1754944e-38, %v1929_v17 }
 0x648   :  { %v1891_v63 = vmul.f32 %v2827_v7, %v1890_v57  ;;  %2834 = vrcp.f32 %v1827_v49  ;;  %v1944_v33 = vand.u32 2147483648, %v1827_v49  ;;  %v1942_v38 = vand.u32 2147483647, %v1827_v49 }
 0x649   :  { %v1906_v16 = vmul.f32 %v2829_v54, %v1905_v0  ;;  %vm1928_vm8 = vcmp.eq.f32.partialorder %v1927_v25, 8.507059e+37  ;;  %vm1938_vm9 = vweird.f32 %v1827_v49 }
 0x64a   :  { %v1892_v3 = vadd.f32 %v2827_v7, %v1891_v63  ;;  %v1945_v23 = vor.u32 1.1754944e-38, %v1944_v33  ;;  %vm1943_vm11 = vcmp.eq.f32.partialorder %v1942_v38, 8.507059e+37 }
 0x64b   :  { %v2833_v15 = vpop.eup %2832  ;;  %v1907_v11 = vadd.f32 %v2829_v54, %v1906_v16 }
 0x64c   :  { %v1919_v4 = vmul.f32 %v2833_v15, %v1826_v53  ;;  %v1896_v62 = vsel %vm3606_vm14, %v2827_v7, %v1892_v3  ;;  %vm1924_vm3 = vweird.f32 %v2833_v15 }
 0x64d   :  { %v1901_v26 = vsel %vm1898_vm1, %v1900_v14, %v1896_v62  ;;  %v1911_v28 = vsel %vm3612_vm2, %v2829_v54, %v1907_v11  ;;  %vm1925_vm6 = vmor %vm1923_vm5, %vm1924_vm3 }
 0x64e   :  { %v2835_v12 = vpop.eup %2834  ;;  %v1920_v60 = vsub.f32 1.0, %v1919_v4  ;;  %v1952_v58 = vmul.f32 %v1901_v26, %v3594_v27  ;;  %v1916_v20 = vsel %vm1913_vm4, %v1915_v10, %v1911_v28 }
 0x64f   :  { %v1934_v61 = vmul.f32 %v2835_v12, %v1827_v49  ;;  %vm1939_vm7 = vweird.f32 %v2835_v12  ;;  %v1953_v22 = vmul.f32 %v1916_v20, %v3596_v44 }
 0x650   :  { %v1921_v24 = vmul.f32 %v2833_v15, %v1920_v60  ;;  %vm1940_vm10 = vmor %vm1938_vm9, %vm1939_vm7  ;;  %v1960_v48 = vmul.f32 %v1952_v58, %v1772_v8 }
 0x651   :  { %v1935_v29 = vsub.f32 1.0, %v1934_v61  ;;  %v1961_v51 = vmul.f32 %v1953_v22, %v1791_v59 }
 0x652   :  { %v1922_v45 = vadd.f32 %v2833_v15, %v1921_v24 }
 0x653   :  { %v1936_v36 = vmul.f32 %v2835_v12, %v1935_v29 }
 0x654   :  { %v1926_v39 = vsel %vm1925_vm6, %v2833_v15, %v1922_v45 }
 0x655   :  { %v1931_v41 = vsel %vm1928_vm8, %v1930_v35, %v1926_v39  ;;  %v1937_v42 = vadd.f32 %v2835_v12, %v1936_v36 }
 0x656   :  { %v1954_v43 = vmul.f32 %v1931_v41, %v3600_v30 }
 0x657   :  { %v1941_v32 = vsel %vm1940_vm10, %v2835_v12, %v1937_v42 }
 0x658   :  { %v1946_v50 = vsel %vm1943_vm11, %v1945_v23, %v1941_v32  ;;  %v1962_v47 = vmul.f32 %v1954_v43, %v1774_v46 }
 0x659   :  { %v1955_v27 = vmul.f32 %v1946_v50, %v3602_v31 }
 0x65a   :  { %v1966_v52 = vpack.c.bf16 %v1962_v47, %v1960_v48 }
 0x65b   :  { %v1963_v7 = vmul.f32 %v1955_v27, %v1793_v2 }
 0x65c   :  { %2109 = vmatmul.bf16.gmra.mxu2 %v1966_v52 }
 0x65d   :  { %v1967_v53 = vpack.c.bf16 %v1963_v7, %v1961_v51 }
 0x65f   :  { %2128 = vmatmul.bf16.gmra.mxu3 %v1967_v53 }
 0x6b5   :  { %v2105_v30 = vpop.f32.mrf.mxu2 }
 0x6b8   :  { %v2124_v54 = vpop.f32.mrf.mxu3 }
 0x6b9   :  { %v2125_v13 = vadd.f32 %v2124_v54, %v2105_v30 }
 0x6bb   :  { %v2134_v44 = vadd.f32 %v2125_v13, %v3539_v21 }
 0x6bd   :  { %2138 = vst [vmem:[#allocation19] sm:$0xff] %v2134_v44  ;;  %v2107_v56 = vpop.f32.mrf.mxu2 }
 0x6c0   :  { %v2126_v1 = vpop.f32.mrf.mxu3 }
 0x6c1   :  { %v2127_v57 = vadd.f32 %v2126_v1, %v2107_v56 }
 0x6c3   :  { %v2135_v49 = vadd.f32 %v2127_v57, %v3543_v37 }
 0x6c5   :  { %2139 = vst [vmem:[#allocation19 + $0x8] sm:$0xff] %v2135_v49 }
 0x6df   :  { %v2110_v31 = vpop.f32.mrf.mxu2 }
 0x6e2   :  { %v2129_v0 = vpop.f32.mrf.mxu3 }
 0x6e3   :  { %v2130_v63 = vadd.f32 %v2129_v0, %v2110_v31 }
 0x6e5   :  { %v2136_v16 = vadd.f32 %v2130_v63, %v3547_v40 }
 0x6e7   :  { %2140 = vst [vmem:[#allocation19 + $0x10] sm:$0xff] %v2136_v16  ;;  %v2112_v3 = vpop.f32.mrf.mxu2 }
 0x6ea   :  { %v2131_v15 = vpop.f32.mrf.mxu3 }
 0x6eb   :  { %v2132_v21 = vadd.f32 %v2131_v15, %v2112_v3 }
 0x6ed   :  { %v2137_v34 = vadd.f32 %v2132_v21, %v3551_v5 }
 0x6ef   :  { %2141 = vst [vmem:[#allocation19 + $0x18] sm:$0xff] %v2137_v34 }
 0x6f0   :  { %2154 = dma.vmem_to_hbm [thread:$0]  %s2147_s1, 512, %s2149_s30, [#allocation4], %s3126_s6, %s3126_s6, %s3127_s23  }
 0x6f1   :  { %3116 = dma.done.wait [#allocation4], 512  }
 0x6f2   :  { %3117 = vsyncadd [#allocation4], 4294966784 }
 0x6f3   :  { %2159 = vsyncpa [#allocation3], 1 }
 0x6f4   :  { %2160 = vsyncpa [#allocation6], 1 }
 0x6f5   :  { %2161 = vsyncpa [#allocation9], 1 }
 0x6f6   :  { %2162 = vsyncpa [#allocation12], 1 }
 0x6f7   :  { %2163 = vsyncpa [#allocation15], 1 }
 0x6f8   :  { %2164 = vsyncpa [#allocation18], 1 }
 0x6f9   :  { %2165 = vsyncpa [#allocation4], 1 }

</bundles_post_ra>
